<compile_context>
chip_gen: v5e
topology: v5e:2x2
jax: 0.10.0
libtpu: 0.0.40
codegen_flags: <defaults>
</compile_context>

<pallas_src>
import math
from functools import partial

import jax
import jax.numpy as jnp
from jax.experimental import pallas as pl
from jax.experimental.pallas import tpu as pltpu

# ---------------- config (small, consistent with the module) ----------------
N_NODES = 16
NUM_NODE_FEATURES = 12
HIDDEN = 32
NUM_LAYERS = 3          # -> 3 TransformerConv layers total
HEADS = 4
DROPOUT = 0.1           # eval mode -> identity

VMEM = pl.BlockSpec(memory_space=pltpu.MemorySpace.VMEM)


# ------------------------------ fused kernel --------------------------------
def _ln(x, g, b):
    mu = jnp.mean(x, axis=-1, keepdims=True)
    var = jnp.mean(jnp.square(x - mu), axis=-1, keepdims=True)
    return (x - mu) * jax.lax.rsqrt(var + 1e-5) * g + b


def _fused_forward_kernel(*refs, layer_cfg, apply_ln):
    """Entire GraphTransformer forward in a single VMEM-resident invocation.

    refs layout:
      [0] x [N,F_in]     [1] adj [N,N]     [2] in_gamma (1,F_in)  [3] in_beta (1,F_in)
      per layer (6): wq(scaled), wk, wv, wskip, gamma(1,H), beta(1,H)
      heads (4): w1cat [H,2*h2], b1cat [1,2*h2], w2blk [2*h2,2], b2cat [1,2]
      [-2] output [N,2]  [-1] VMEM scratch [N,HIDDEN]
    """
    o_ref, h_scr = refs[-2], refs[-1]
    x_ref, adj_ref, ing_ref, inb_ref = refs[0:4]

    x = x_ref[...].astype(jnp.float32)
    adj = adj_ref[...].astype(jnp.float32)
    # additive mask, computed once and shared by all heads and all layers
    neg_mask = (adj - 1.0) * 1e30              # 0.0 on edges, -1e30 elsewhere

    if apply_ln:
        x = _ln(x, ing_ref[...], inb_ref[...])

    num_layers = len(layer_cfg)
    idx = 4
    for i, (heads, head_dim) in enumerate(layer_cfg):
        wq_ref, wk_ref, wv_ref, ws_ref, g_ref, b_ref = refs[idx:idx + 6]
        idx += 6
        x_res = x if x.shape[-1] == HIDDEN else None

        # wq already carries the 1/sqrt(head_dim) scale (folded at init time)
        q = jnp.dot(x, wq_ref[...], preferred_element_type=jnp.float32)
        k = jnp.dot(x, wk_ref[...], preferred_element_type=jnp.float32)
        v = jnp.dot(x, wv_ref[...], preferred_element_type=jnp.float32)
        skip = jnp.dot(x, ws_ref[...], preferred_element_type=jnp.float32)

        for h in range(heads):                 # static unroll, small head count
            lo, hi = h * head_dim, (h + 1) * head_dim
            qs, ks, vs = q[:, lo:hi], k[:, lo:hi], v[:, lo:hi]
            scores = jax.lax.dot_general(      # q . k^T without explicit .T
                qs, ks, (((1,), (1,)), ((), ())),
                preferred_element_type=jnp.float32) + neg_mask
            m = jnp.max(scores, axis=-1, keepdims=True)
            p = jnp.exp(scores - m) * adj      # exact zeros off-graph
            denom = jnp.sum(p, axis=-1, keepdims=True)
            alpha = p / jnp.where(denom > 0.0, denom, 1.0)  # no in-edges -> 0
            # write this head's slab directly into the accumulator slice
            h_scr[:, lo:hi] = jnp.dot(alpha, vs, preferred_element_type=jnp.float32)

        x = h_scr[...] + skip
        if apply_ln:
            x = _ln(x, g_ref[...], b_ref[...])
        if x_res is not None and i > 0:
            x = x + 0.1 * x_res
        if i < num_layers - 1:
            x = jnp.maximum(x, 0.0)
            # TODO(synk): dropout is identity in eval mode; training-mode dropout not emitted.

    # fused rtt/retrans heads: relu(x @ [W1r|W1t] + [b1r|b1t]) @ blockdiag(W2r,W2t) + [b2r|b2t]
    w1_ref, b1_ref, w2_ref, b2_ref = refs[idx:idx + 4]
    hcat = jnp.maximum(
        jnp.dot(x, w1_ref[...], preferred_element_type=jnp.float32) + b1_ref[...], 0.0)
    o_ref[...] = jnp.dot(hcat, w2_ref[...], preferred_element_type=jnp.float32) + b2_ref[...]


def build_forward(n, layer_cfg, apply_ln):
    n_inputs = 4 + 6 * len(layer_cfg) + 4
    kernel = partial(_fused_forward_kernel,
                     layer_cfg=tuple(layer_cfg), apply_ln=bool(apply_ln))
    call = pl.pallas_call(
        kernel,
        out_shape=jax.ShapeDtypeStruct((n, 2), jnp.float32),
        in_specs=[VMEM] * n_inputs,
        out_specs=VMEM,
        scratch_shapes=[pltpu.VMEM((n, HIDDEN), jnp.float32)],
    )
    return jax.jit(call)


# ------------------------------ parameter init ------------------------------
def _xavier(key, fan_in, fan_out, gain=1.0):
    bound = gain * math.sqrt(6.0 / (fan_in + fan_out))
    return jax.random.uniform(key, (fan_in, fan_out), jnp.float32, -bound, bound)


def init_params(key):
    keys = iter(jax.random.split(key, 64))
    conv_cfg = [(NUM_NODE_FEATURES, HEADS, HIDDEN // HEADS)]
    for _ in range(NUM_LAYERS - 2):
        conv_cfg.append((HIDDEN, HEADS, HIDDEN // HEADS))
    conv_cfg.append((HIDDEN, 1, HIDDEN))

    convs, norms = [], []
    for in_dim, heads, head_dim in conv_cfg:
        out_dim = heads * head_dim
        convs.append(dict(
            wq=_xavier(next(keys), in_dim, out_dim),
            wk=_xavier(next(keys), in_dim, out_dim),
            wv=_xavier(next(keys), in_dim, out_dim),
            wskip=_xavier(next(keys), in_dim, out_dim),
            heads=heads, head_dim=head_dim))
        norms.append(dict(gamma=jnp.ones((HIDDEN,), jnp.float32),
                          beta=jnp.zeros((HIDDEN,), jnp.float32)))

    def head_params():
        h2 = HIDDEN // 2
        return dict(
            w1=_xavier(next(keys), HIDDEN, h2, gain=0.5),
            b1=jnp.zeros((1, h2), jnp.float32),
            w2=_xavier(next(keys), h2, 1, gain=0.5).reshape(1, h2),
            b2=jnp.zeros((1, 1), jnp.float32))

    return dict(
        in_gamma=jnp.ones((NUM_NODE_FEATURES,), jnp.float32),
        in_beta=jnp.zeros((NUM_NODE_FEATURES,), jnp.float32),
        convs=convs, norms=norms,
        rtt=head_params(), retrans=head_params())


def fold_params(params):
    """One-time (outside the hot path) constant transforms -> flat kernel args."""
    args = [params["in_gamma"].reshape(1, -1),
            params["in_beta"].reshape(1, -1)]
    for cp, npar in zip(params["convs"], params["norms"]):
        scale = 1.0 / math.sqrt(cp["head_dim"])
        args += [cp["wq"] * scale, cp["wk"], cp["wv"], cp["wskip"],
                 npar["gamma"].reshape(1, -1), npar["beta"].reshape(1, -1)]
    h2 = HIDDEN // 2
    rtt, ret = params["rtt"], params["retrans"]
    w1cat = jnp.concatenate([rtt["w1"], ret["w1"]], axis=1)         # [H, 2*h2]
    b1cat = jnp.concatenate([rtt["b1"], ret["b1"]], axis=1)         # [1, 2*h2]
    w2blk = jnp.zeros((2 * h2, 2), jnp.float32)
    w2blk = w2blk.at[:h2, 0].set(rtt["w2"].reshape(-1))
    w2blk = w2blk.at[h2:, 1].set(ret["w2"].reshape(-1))             # [2*h2, 2]
    b2cat = jnp.concatenate([rtt["b2"], ret["b2"]], axis=1)         # [1, 2]
    args += [w1cat, b1cat, w2blk, b2cat]
    return args


# --------------------------- pure-JAX reference ------------------------------
def _ref_ln(x, g, b):
    mu = jnp.mean(x, -1, keepdims=True)
    var = jnp.mean(jnp.square(x - mu), -1, keepdims=True)
    return (x - mu) * jax.lax.rsqrt(var + 1e-5) * g + b


def _ref_conv(x, adj, cp):
    heads, d = cp["heads"], cp["head_dim"]
    q, k, v, skip = x @ cp["wq"], x @ cp["wk"], x @ cp["wv"], x @ cp["wskip"]
    outs = []
    for h in range(heads):
        sl = slice(h * d, (h + 1) * d)
        s = (q[:, sl] @ k[:, sl].T) / math.sqrt(d)
        s = jnp.where(adj > 0, s, -1e30)
        m = jnp.max(s, -1, keepdims=True)
        p = jnp.where(adj > 0, jnp.exp(s - m), 0.0)
        den = jnp.sum(p, -1, keepdims=True)
        outs.append((p / jnp.where(den > 0, den, 1.0)) @ v[:, sl])
    return jnp.concatenate(outs, -1) + skip


def ref_forward(x, adj, params):
    n = x.shape[0]
    if n > 1:                                    # matches PyTorch guard
        x = _ref_ln(x, params["in_gamma"], params["in_beta"])
    nconvs = len(params["convs"])
    for i, (cp, npar) in enumerate(zip(params["convs"], params["norms"])):
        x_res = x if x.shape[-1] == HIDDEN else None
        x = _ref_conv(x, adj, cp)
        if n > 1:
            x = _ref_ln(x, npar["gamma"], npar["beta"])
        if x_res is not None and i > 0:
            x = x + 0.1 * x_res
        if i < nconvs - 1:
            x = jnp.maximum(x, 0.0)

    def head(p):
        h = jnp.maximum(x @ p["w1"] + p["b1"], 0.0)
        return jnp.sum(h * p["w2"], -1, keepdims=True) + p["b2"]

    return jnp.concatenate([head(params["rtt"]), head(params["retrans"])], axis=1)


# ----------------------------------- main ------------------------------------
if __name__ == "__main__":
    key = jax.random.PRNGKey(0)
    k_x, k_p = jax.random.split(key)

    # synthetic graph: self loop + ring neighbors (every node has in-edges)
    src, dst = [], []
    for i in range(N_NODES):
        for s in (i, (i - 1) % N_NODES, (i + 1) % N_NODES):
            src.append(s)
            dst.append(i)
    edge_index = jnp.array([src, dst], dtype=jnp.int32)        # [2, E]
    adj = jnp.zeros((N_NODES, N_NODES), jnp.float32).at[
        edge_index[1], edge_index[0]].set(1.0)                  # adj[dst, src]

    x = jax.random.normal(k_x, (N_NODES, NUM_NODE_FEATURES), jnp.float32)
    params = init_params(k_p)

    layer_cfg = [(cp["heads"], cp["head_dim"]) for cp in params["convs"]]
    fwd = build_forward(N_NODES, layer_cfg, apply_ln=(N_NODES > 1))
    flat_args = fold_params(params)

    out = jax.block_until_ready(fwd(x, adj, *flat_args))
    ref = jax.block_until_ready(ref_forward(x, adj, params))

    assert out.shape == (N_NODES, 2), out.shape
    assert bool(jnp.all(jnp.isfinite(out)))
    assert bool(jnp.allclose(out, ref, rtol=2e-3, atol=2e-3)), (out, ref)
    print("KERNEL_OK")
</pallas_src>

<mosaic_0001>
module attributes {stable_mosaic.version = 11 : i64} {
  func.func @_fused_forward_kernel(%arg0: memref<16x12xf32, #tpu.memory_space<vmem>>, %arg1: memref<16x16xf32, #tpu.memory_space<vmem>>, %arg2: memref<1x12xf32, #tpu.memory_space<vmem>>, %arg3: memref<1x12xf32, #tpu.memory_space<vmem>>, %arg4: memref<12x32xf32, #tpu.memory_space<vmem>>, %arg5: memref<12x32xf32, #tpu.memory_space<vmem>>, %arg6: memref<12x32xf32, #tpu.memory_space<vmem>>, %arg7: memref<12x32xf32, #tpu.memory_space<vmem>>, %arg8: memref<1x32xf32, #tpu.memory_space<vmem>>, %arg9: memref<1x32xf32, #tpu.memory_space<vmem>>, %arg10: memref<32x32xf32, #tpu.memory_space<vmem>>, %arg11: memref<32x32xf32, #tpu.memory_space<vmem>>, %arg12: memref<32x32xf32, #tpu.memory_space<vmem>>, %arg13: memref<32x32xf32, #tpu.memory_space<vmem>>, %arg14: memref<1x32xf32, #tpu.memory_space<vmem>>, %arg15: memref<1x32xf32, #tpu.memory_space<vmem>>, %arg16: memref<32x32xf32, #tpu.memory_space<vmem>>, %arg17: memref<32x32xf32, #tpu.memory_space<vmem>>, %arg18: memref<32x32xf32, #tpu.memory_space<vmem>>, %arg19: memref<32x32xf32, #tpu.memory_space<vmem>>, %arg20: memref<1x32xf32, #tpu.memory_space<vmem>>, %arg21: memref<1x32xf32, #tpu.memory_space<vmem>>, %arg22: memref<32x32xf32, #tpu.memory_space<vmem>>, %arg23: memref<1x32xf32, #tpu.memory_space<vmem>>, %arg24: memref<32x2xf32, #tpu.memory_space<vmem>>, %arg25: memref<1x2xf32, #tpu.memory_space<vmem>>, %arg26: memref<16x2xf32, #tpu.memory_space<vmem>>, %arg27: memref<16x32xf32, #tpu.memory_space<vmem>>) attributes {dimension_semantics = [], scalar_prefetch = 0 : i64, scratch_operands = 1 : i64, tpu.core_type = #tpu.core_type<tc>} {
    %c0 = arith.constant 0 : index
    %c0_0 = arith.constant 0 : index
    %0 = vector.load %arg0[%c0, %c0_0] : memref<16x12xf32, #tpu.memory_space<vmem>>, vector<16x12xf32>
    %c0_1 = arith.constant 0 : index
    %c0_2 = arith.constant 0 : index
    %1 = vector.load %arg1[%c0_1, %c0_2] : memref<16x16xf32, #tpu.memory_space<vmem>>, vector<16x16xf32>
    %cst = arith.constant 1.000000e+00 : f32
    %2 = vector.broadcast %cst : f32 to vector<16x16xf32>
    %3 = arith.subf %1, %2 : vector<16x16xf32>
    %cst_3 = arith.constant 1.000000e+30 : f32
    %4 = vector.broadcast %cst_3 : f32 to vector<16x16xf32>
    %5 = arith.mulf %3, %4 : vector<16x16xf32>
    %c0_4 = arith.constant 0 : index
    %c0_5 = arith.constant 0 : index
    %6 = vector.load %arg2[%c0_4, %c0_5] : memref<1x12xf32, #tpu.memory_space<vmem>>, vector<1x12xf32>
    %c0_6 = arith.constant 0 : index
    %c0_7 = arith.constant 0 : index
    %7 = vector.load %arg3[%c0_6, %c0_7] : memref<1x12xf32, #tpu.memory_space<vmem>>, vector<1x12xf32>
    %cst_8 = arith.constant dense<0.000000e+00> : vector<16xf32>
    %8 = vector.multi_reduction <add>, %0, %cst_8 [1] : vector<16x12xf32> to vector<16xf32>
    %9 = vector.shape_cast %8 : vector<16xf32> to vector<16x1xf32>
    %cst_9 = arith.constant 1.200000e+01 : f32
    %10 = vector.broadcast %cst_9 : f32 to vector<16x1xf32>
    %11 = arith.divf %9, %10 : vector<16x1xf32>
    %12 = vector.broadcast %11 : vector<16x1xf32> to vector<16x12xf32>
    %13 = arith.subf %0, %12 : vector<16x12xf32>
    %14 = arith.mulf %13, %13 : vector<16x12xf32>
    %cst_10 = arith.constant dense<0.000000e+00> : vector<16xf32>
    %15 = vector.multi_reduction <add>, %14, %cst_10 [1] : vector<16x12xf32> to vector<16xf32>
    %16 = vector.shape_cast %15 : vector<16xf32> to vector<16x1xf32>
    %cst_11 = arith.constant 1.200000e+01 : f32
    %17 = vector.broadcast %cst_11 : f32 to vector<16x1xf32>
    %18 = arith.divf %16, %17 : vector<16x1xf32>
    %19 = vector.broadcast %11 : vector<16x1xf32> to vector<16x12xf32>
    %20 = arith.subf %0, %19 : vector<16x12xf32>
    %cst_12 = arith.constant 9.99999974E-6 : f32
    %21 = vector.broadcast %cst_12 : f32 to vector<16x1xf32>
    %22 = arith.addf %18, %21 : vector<16x1xf32>
    %23 = math.rsqrt %22 : vector<16x1xf32>
    %24 = vector.broadcast %23 : vector<16x1xf32> to vector<16x12xf32>
    %25 = arith.mulf %20, %24 : vector<16x12xf32>
    %26 = vector.broadcast %6 : vector<1x12xf32> to vector<16x12xf32>
    %27 = arith.mulf %25, %26 : vector<16x12xf32>
    %28 = vector.broadcast %7 : vector<1x12xf32> to vector<16x12xf32>
    %29 = arith.addf %27, %28 : vector<16x12xf32>
    %c0_13 = arith.constant 0 : index
    %c0_14 = arith.constant 0 : index
    %30 = vector.load %arg4[%c0_13, %c0_14] : memref<12x32xf32, #tpu.memory_space<vmem>>, vector<12x32xf32>
    %cst_15 = arith.constant dense<0.000000e+00> : vector<16x32xf32>
    %31 = tpu.matmul %29, %30, %cst_15 {dimension_numbers = #tpu.dot_dimension_numbers<[1], [0], [0], [1], [0, 0, 1, 1], [], []>} : vector<16x12xf32>, vector<12x32xf32>, vector<16x32xf32> -> vector<16x32xf32>
    %c0_16 = arith.constant 0 : index
    %c0_17 = arith.constant 0 : index
    %32 = vector.load %arg5[%c0_16, %c0_17] : memref<12x32xf32, #tpu.memory_space<vmem>>, vector<12x32xf32>
    %cst_18 = arith.constant dense<0.000000e+00> : vector<16x32xf32>
    %33 = tpu.matmul %29, %32, %cst_18 {dimension_numbers = #tpu.dot_dimension_numbers<[1], [0], [0], [1], [0, 0, 1, 1], [], []>} : vector<16x12xf32>, vector<12x32xf32>, vector<16x32xf32> -> vector<16x32xf32>
    %c0_19 = arith.constant 0 : index
    %c0_20 = arith.constant 0 : index
    %34 = vector.load %arg6[%c0_19, %c0_20] : memref<12x32xf32, #tpu.memory_space<vmem>>, vector<12x32xf32>
    %cst_21 = arith.constant dense<0.000000e+00> : vector<16x32xf32>
    %35 = tpu.matmul %29, %34, %cst_21 {dimension_numbers = #tpu.dot_dimension_numbers<[1], [0], [0], [1], [0, 0, 1, 1], [], []>} : vector<16x12xf32>, vector<12x32xf32>, vector<16x32xf32> -> vector<16x32xf32>
    %c0_22 = arith.constant 0 : index
    %c0_23 = arith.constant 0 : index
    %36 = vector.load %arg7[%c0_22, %c0_23] : memref<12x32xf32, #tpu.memory_space<vmem>>, vector<12x32xf32>
    %cst_24 = arith.constant dense<0.000000e+00> : vector<16x32xf32>
    %37 = tpu.matmul %29, %36, %cst_24 {dimension_numbers = #tpu.dot_dimension_numbers<[1], [0], [0], [1], [0, 0, 1, 1], [], []>} : vector<16x12xf32>, vector<12x32xf32>, vector<16x32xf32> -> vector<16x32xf32>
    %38 = vector.extract_strided_slice %31 {offsets = [0, 0], sizes = [16, 8], strides = [1, 1]} : vector<16x32xf32> to vector<16x8xf32>
    %39 = vector.extract_strided_slice %33 {offsets = [0, 0], sizes = [16, 8], strides = [1, 1]} : vector<16x32xf32> to vector<16x8xf32>
    %40 = vector.extract_strided_slice %35 {offsets = [0, 0], sizes = [16, 8], strides = [1, 1]} : vector<16x32xf32> to vector<16x8xf32>
    %cst_25 = arith.constant dense<0.000000e+00> : vector<16x16xf32>
    %41 = tpu.matmul %38, %39, %cst_25 {dimension_numbers = #tpu.dot_dimension_numbers<[1], [1], [0], [0], [0, 0, 1, 0], [], []>} : vector<16x8xf32>, vector<16x8xf32>, vector<16x16xf32> -> vector<16x16xf32>
    %42 = arith.addf %41, %5 : vector<16x16xf32>
    %cst_26 = arith.constant dense<0xFF800000> : vector<16xf32>
    %43 = vector.multi_reduction <maximumf>, %42, %cst_26 [1] : vector<16x16xf32> to vector<16xf32>
    %44 = vector.shape_cast %43 : vector<16xf32> to vector<16x1xf32>
    %45 = vector.broadcast %44 : vector<16x1xf32> to vector<16x16xf32>
    %46 = arith.subf %42, %45 : vector<16x16xf32>
    %47 = math.exp %46 : vector<16x16xf32>
    %48 = arith.mulf %47, %1 : vector<16x16xf32>
    %cst_27 = arith.constant dense<0.000000e+00> : vector<16xf32>
    %49 = vector.multi_reduction <add>, %48, %cst_27 [1] : vector<16x16xf32> to vector<16xf32>
    %50 = vector.shape_cast %49 : vector<16xf32> to vector<16x1xf32>
    %cst_28 = arith.constant 0.000000e+00 : f32
    %51 = vector.broadcast %cst_28 : f32 to vector<16x1xf32>
    %52 = arith.cmpf ogt, %50, %51 : vector<16x1xf32>
    %cst_29 = arith.constant 1.000000e+00 : f32
    %53 = vector.broadcast %cst_29 : f32 to vector<16x1xf32>
    %54 = arith.select %52, %50, %53 : vector<16x1xi1>, vector<16x1xf32>
    %55 = vector.broadcast %54 : vector<16x1xf32> to vector<16x16xf32>
    %56 = arith.divf %48, %55 : vector<16x16xf32>
    %cst_30 = arith.constant dense<0.000000e+00> : vector<16x8xf32>
    %57 = tpu.matmul %56, %40, %cst_30 {dimension_numbers = #tpu.dot_dimension_numbers<[1], [0], [0], [1], [0, 0, 1, 1], [], []>} : vector<16x16xf32>, vector<16x8xf32>, vector<16x8xf32> -> vector<16x8xf32>
    %c0_31 = arith.constant 0 : index
    %c0_32 = arith.constant 0 : index
    %58 = vector.load %arg27[%c0_31, %c0_32] : memref<16x32xf32, #tpu.memory_space<vmem>>, vector<16x8xf32>
    tpu.vector_store %arg27[%c0_31, %c0_32], %57 {strides = array<i32>} : memref<16x32xf32, #tpu.memory_space<vmem>>, vector<16x8xf32>,
    %59 = vector.extract_strided_slice %31 {offsets = [0, 8], sizes = [16, 8], strides = [1, 1]} : vector<16x32xf32> to vector<16x8xf32>
    %60 = vector.extract_strided_slice %33 {offsets = [0, 8], sizes = [16, 8], strides = [1, 1]} : vector<16x32xf32> to vector<16x8xf32>
    %61 = vector.extract_strided_slice %35 {offsets = [0, 8], sizes = [16, 8], strides = [1, 1]} : vector<16x32xf32> to vector<16x8xf32>
    %cst_33 = arith.constant dense<0.000000e+00> : vector<16x16xf32>
    %62 = tpu.matmul %59, %60, %cst_33 {dimension_numbers = #tpu.dot_dimension_numbers<[1], [1], [0], [0], [0, 0, 1, 0], [], []>} : vector<16x8xf32>, vector<16x8xf32>, vector<16x16xf32> -> vector<16x16xf32>
    %63 = arith.addf %62, %5 : vector<16x16xf32>
    %cst_34 = arith.constant dense<0xFF800000> : vector<16xf32>
    %64 = vector.multi_reduction <maximumf>, %63, %cst_34 [1] : vector<16x16xf32> to vector<16xf32>
    %65 = vector.shape_cast %64 : vector<16xf32> to vector<16x1xf32>
    %66 = vector.broadcast %65 : vector<16x1xf32> to vector<16x16xf32>
    %67 = arith.subf %63, %66 : vector<16x16xf32>
    %68 = math.exp %67 : vector<16x16xf32>
    %69 = arith.mulf %68, %1 : vector<16x16xf32>
    %cst_35 = arith.constant dense<0.000000e+00> : vector<16xf32>
    %70 = vector.multi_reduction <add>, %69, %cst_35 [1] : vector<16x16xf32> to vector<16xf32>
    %71 = vector.shape_cast %70 : vector<16xf32> to vector<16x1xf32>
    %cst_36 = arith.constant 0.000000e+00 : f32
    %72 = vector.broadcast %cst_36 : f32 to vector<16x1xf32>
    %73 = arith.cmpf ogt, %71, %72 : vector<16x1xf32>
    %cst_37 = arith.constant 1.000000e+00 : f32
    %74 = vector.broadcast %cst_37 : f32 to vector<16x1xf32>
    %75 = arith.select %73, %71, %74 : vector<16x1xi1>, vector<16x1xf32>
    %76 = vector.broadcast %75 : vector<16x1xf32> to vector<16x16xf32>
    %77 = arith.divf %69, %76 : vector<16x16xf32>
    %cst_38 = arith.constant dense<0.000000e+00> : vector<16x8xf32>
    %78 = tpu.matmul %77, %61, %cst_38 {dimension_numbers = #tpu.dot_dimension_numbers<[1], [0], [0], [1], [0, 0, 1, 1], [], []>} : vector<16x16xf32>, vector<16x8xf32>, vector<16x8xf32> -> vector<16x8xf32>
    %c0_39 = arith.constant 0 : index
    %c8 = arith.constant 8 : index
    %79 = vector.load %arg27[%c0_39, %c8] : memref<16x32xf32, #tpu.memory_space<vmem>>, vector<16x8xf32>
    tpu.vector_store %arg27[%c0_39, %c8], %78 {strides = array<i32>} : memref<16x32xf32, #tpu.memory_space<vmem>>, vector<16x8xf32>,
    %80 = vector.extract_strided_slice %31 {offsets = [0, 16], sizes = [16, 8], strides = [1, 1]} : vector<16x32xf32> to vector<16x8xf32>
    %81 = vector.extract_strided_slice %33 {offsets = [0, 16], sizes = [16, 8], strides = [1, 1]} : vector<16x32xf32> to vector<16x8xf32>
    %82 = vector.extract_strided_slice %35 {offsets = [0, 16], sizes = [16, 8], strides = [1, 1]} : vector<16x32xf32> to vector<16x8xf32>
    %cst_40 = arith.constant dense<0.000000e+00> : vector<16x16xf32>
    %83 = tpu.matmul %80, %81, %cst_40 {dimension_numbers = #tpu.dot_dimension_numbers<[1], [1], [0], [0], [0, 0, 1, 0], [], []>} : vector<16x8xf32>, vector<16x8xf32>, vector<16x16xf32> -> vector<16x16xf32>
    %84 = arith.addf %83, %5 : vector<16x16xf32>
    %cst_41 = arith.constant dense<0xFF800000> : vector<16xf32>
    %85 = vector.multi_reduction <maximumf>, %84, %cst_41 [1] : vector<16x16xf32> to vector<16xf32>
    %86 = vector.shape_cast %85 : vector<16xf32> to vector<16x1xf32>
    %87 = vector.broadcast %86 : vector<16x1xf32> to vector<16x16xf32>
    %88 = arith.subf %84, %87 : vector<16x16xf32>
    %89 = math.exp %88 : vector<16x16xf32>
    %90 = arith.mulf %89, %1 : vector<16x16xf32>
    %cst_42 = arith.constant dense<0.000000e+00> : vector<16xf32>
    %91 = vector.multi_reduction <add>, %90, %cst_42 [1] : vector<16x16xf32> to vector<16xf32>
    %92 = vector.shape_cast %91 : vector<16xf32> to vector<16x1xf32>
    %cst_43 = arith.constant 0.000000e+00 : f32
    %93 = vector.broadcast %cst_43 : f32 to vector<16x1xf32>
    %94 = arith.cmpf ogt, %92, %93 : vector<16x1xf32>
    %cst_44 = arith.constant 1.000000e+00 : f32
    %95 = vector.broadcast %cst_44 : f32 to vector<16x1xf32>
    %96 = arith.select %94, %92, %95 : vector<16x1xi1>, vector<16x1xf32>
    %97 = vector.broadcast %96 : vector<16x1xf32> to vector<16x16xf32>
    %98 = arith.divf %90, %97 : vector<16x16xf32>
    %cst_45 = arith.constant dense<0.000000e+00> : vector<16x8xf32>
    %99 = tpu.matmul %98, %82, %cst_45 {dimension_numbers = #tpu.dot_dimension_numbers<[1], [0], [0], [1], [0, 0, 1, 1], [], []>} : vector<16x16xf32>, vector<16x8xf32>, vector<16x8xf32> -> vector<16x8xf32>
    %c0_46 = arith.constant 0 : index
    %c16 = arith.constant 16 : index
    %100 = vector.load %arg27[%c0_46, %c16] : memref<16x32xf32, #tpu.memory_space<vmem>>, vector<16x8xf32>
    tpu.vector_store %arg27[%c0_46, %c16], %99 {strides = array<i32>} : memref<16x32xf32, #tpu.memory_space<vmem>>, vector<16x8xf32>,
    %101 = vector.extract_strided_slice %31 {offsets = [0, 24], sizes = [16, 8], strides = [1, 1]} : vector<16x32xf32> to vector<16x8xf32>
    %102 = vector.extract_strided_slice %33 {offsets = [0, 24], sizes = [16, 8], strides = [1, 1]} : vector<16x32xf32> to vector<16x8xf32>
    %103 = vector.extract_strided_slice %35 {offsets = [0, 24], sizes = [16, 8], strides = [1, 1]} : vector<16x32xf32> to vector<16x8xf32>
    %cst_47 = arith.constant dense<0.000000e+00> : vector<16x16xf32>
    %104 = tpu.matmul %101, %102, %cst_47 {dimension_numbers = #tpu.dot_dimension_numbers<[1], [1], [0], [0], [0, 0, 1, 0], [], []>} : vector<16x8xf32>, vector<16x8xf32>, vector<16x16xf32> -> vector<16x16xf32>
    %105 = arith.addf %104, %5 : vector<16x16xf32>
    %cst_48 = arith.constant dense<0xFF800000> : vector<16xf32>
    %106 = vector.multi_reduction <maximumf>, %105, %cst_48 [1] : vector<16x16xf32> to vector<16xf32>
    %107 = vector.shape_cast %106 : vector<16xf32> to vector<16x1xf32>
    %108 = vector.broadcast %107 : vector<16x1xf32> to vector<16x16xf32>
    %109 = arith.subf %105, %108 : vector<16x16xf32>
    %110 = math.exp %109 : vector<16x16xf32>
    %111 = arith.mulf %110, %1 : vector<16x16xf32>
    %cst_49 = arith.constant dense<0.000000e+00> : vector<16xf32>
    %112 = vector.multi_reduction <add>, %111, %cst_49 [1] : vector<16x16xf32> to vector<16xf32>
    %113 = vector.shape_cast %112 : vector<16xf32> to vector<16x1xf32>
    %cst_50 = arith.constant 0.000000e+00 : f32
    %114 = vector.broadcast %cst_50 : f32 to vector<16x1xf32>
    %115 = arith.cmpf ogt, %113, %114 : vector<16x1xf32>
    %cst_51 = arith.constant 1.000000e+00 : f32
    %116 = vector.broadcast %cst_51 : f32 to vector<16x1xf32>
    %117 = arith.select %115, %113, %116 : vector<16x1xi1>, vector<16x1xf32>
    %118 = vector.broadcast %117 : vector<16x1xf32> to vector<16x16xf32>
    %119 = arith.divf %111, %118 : vector<16x16xf32>
    %cst_52 = arith.constant dense<0.000000e+00> : vector<16x8xf32>
    %120 = tpu.matmul %119, %103, %cst_52 {dimension_numbers = #tpu.dot_dimension_numbers<[1], [0], [0], [1], [0, 0, 1, 1], [], []>} : vector<16x16xf32>, vector<16x8xf32>, vector<16x8xf32> -> vector<16x8xf32>
    %c0_53 = arith.constant 0 : index
    %c24 = arith.constant 24 : index
    %121 = vector.load %arg27[%c0_53, %c24] : memref<16x32xf32, #tpu.memory_space<vmem>>, vector<16x8xf32>
    tpu.vector_store %arg27[%c0_53, %c24], %120 {strides = array<i32>} : memref<16x32xf32, #tpu.memory_space<vmem>>, vector<16x8xf32>,
    %c0_54 = arith.constant 0 : index
    %c0_55 = arith.constant 0 : index
    %122 = vector.load %arg27[%c0_54, %c0_55] : memref<16x32xf32, #tpu.memory_space<vmem>>, vector<16x32xf32>
    %123 = arith.addf %122, %37 : vector<16x32xf32>
    %c0_56 = arith.constant 0 : index
    %c0_57 = arith.constant 0 : index
    %124 = vector.load %arg8[%c0_56, %c0_57] : memref<1x32xf32, #tpu.memory_space<vmem>>, vector<1x32xf32>
    %c0_58 = arith.constant 0 : index
    %c0_59 = arith.constant 0 : index
    %125 = vector.load %arg9[%c0_58, %c0_59] : memref<1x32xf32, #tpu.memory_space<vmem>>, vector<1x32xf32>
    %cst_60 = arith.constant dense<0.000000e+00> : vector<16xf32>
    %126 = vector.multi_reduction <add>, %123, %cst_60 [1] : vector<16x32xf32> to vector<16xf32>
    %127 = vector.shape_cast %126 : vector<16xf32> to vector<16x1xf32>
    %cst_61 = arith.constant 3.200000e+01 : f32
    %128 = vector.broadcast %cst_61 : f32 to vector<16x1xf32>
    %129 = arith.divf %127, %128 : vector<16x1xf32>
    %130 = vector.broadcast %129 : vector<16x1xf32> to vector<16x32xf32>
    %131 = arith.subf %123, %130 : vector<16x32xf32>
    %132 = arith.mulf %131, %131 : vector<16x32xf32>
    %cst_62 = arith.constant dense<0.000000e+00> : vector<16xf32>
    %133 = vector.multi_reduction <add>, %132, %cst_62 [1] : vector<16x32xf32> to vector<16xf32>
    %134 = vector.shape_cast %133 : vector<16xf32> to vector<16x1xf32>
    %cst_63 = arith.constant 3.200000e+01 : f32
    %135 = vector.broadcast %cst_63 : f32 to vector<16x1xf32>
    %136 = arith.divf %134, %135 : vector<16x1xf32>
    %137 = vector.broadcast %129 : vector<16x1xf32> to vector<16x32xf32>
    %138 = arith.subf %123, %137 : vector<16x32xf32>
    %cst_64 = arith.constant 9.99999974E-6 : f32
    %139 = vector.broadcast %cst_64 : f32 to vector<16x1xf32>
    %140 = arith.addf %136, %139 : vector<16x1xf32>
    %141 = math.rsqrt %140 : vector<16x1xf32>
    %142 = vector.broadcast %141 : vector<16x1xf32> to vector<16x32xf32>
    %143 = arith.mulf %138, %142 : vector<16x32xf32>
    %144 = vector.broadcast %124 : vector<1x32xf32> to vector<16x32xf32>
    %145 = arith.mulf %143, %144 : vector<16x32xf32>
    %146 = vector.broadcast %125 : vector<1x32xf32> to vector<16x32xf32>
    %147 = arith.addf %145, %146 : vector<16x32xf32>
    %cst_65 = arith.constant 0.000000e+00 : f32
    %148 = vector.broadcast %cst_65 : f32 to vector<16x32xf32>
    %149 = arith.maximumf %147, %148 : vector<16x32xf32>
    %c0_66 = arith.constant 0 : index
    %c0_67 = arith.constant 0 : index
    %150 = vector.load %arg10[%c0_66, %c0_67] : memref<32x32xf32, #tpu.memory_space<vmem>>, vector<32x32xf32>
    %cst_68 = arith.constant dense<0.000000e+00> : vector<16x32xf32>
    %151 = tpu.matmul %149, %150, %cst_68 {dimension_numbers = #tpu.dot_dimension_numbers<[1], [0], [0], [1], [0, 0, 1, 1], [], []>} : vector<16x32xf32>, vector<32x32xf32>, vector<16x32xf32> -> vector<16x32xf32>
    %c0_69 = arith.constant 0 : index
    %c0_70 = arith.constant 0 : index
    %152 = vector.load %arg11[%c0_69, %c0_70] : memref<32x32xf32, #tpu.memory_space<vmem>>, vector<32x32xf32>
    %cst_71 = arith.constant dense<0.000000e+00> : vector<16x32xf32>
    %153 = tpu.matmul %149, %152, %cst_71 {dimension_numbers = #tpu.dot_dimension_numbers<[1], [0], [0], [1], [0, 0, 1, 1], [], []>} : vector<16x32xf32>, vector<32x32xf32>, vector<16x32xf32> -> vector<16x32xf32>
    %c0_72 = arith.constant 0 : index
    %c0_73 = arith.constant 0 : index
    %154 = vector.load %arg12[%c0_72, %c0_73] : memref<32x32xf32, #tpu.memory_space<vmem>>, vector<32x32xf32>
    %cst_74 = arith.constant dense<0.000000e+00> : vector<16x32xf32>
    %155 = tpu.matmul %149, %154, %cst_74 {dimension_numbers = #tpu.dot_dimension_numbers<[1], [0], [0], [1], [0, 0, 1, 1], [], []>} : vector<16x32xf32>, vector<32x32xf32>, vector<16x32xf32> -> vector<16x32xf32>
    %c0_75 = arith.constant 0 : index
    %c0_76 = arith.constant 0 : index
    %156 = vector.load %arg13[%c0_75, %c0_76] : memref<32x32xf32, #tpu.memory_space<vmem>>, vector<32x32xf32>
    %cst_77 = arith.constant dense<0.000000e+00> : vector<16x32xf32>
    %157 = tpu.matmul %149, %156, %cst_77 {dimension_numbers = #tpu.dot_dimension_numbers<[1], [0], [0], [1], [0, 0, 1, 1], [], []>} : vector<16x32xf32>, vector<32x32xf32>, vector<16x32xf32> -> vector<16x32xf32>
    %158 = vector.extract_strided_slice %151 {offsets = [0, 0], sizes = [16, 8], strides = [1, 1]} : vector<16x32xf32> to vector<16x8xf32>
    %159 = vector.extract_strided_slice %153 {offsets = [0, 0], sizes = [16, 8], strides = [1, 1]} : vector<16x32xf32> to vector<16x8xf32>
    %160 = vector.extract_strided_slice %155 {offsets = [0, 0], sizes = [16, 8], strides = [1, 1]} : vector<16x32xf32> to vector<16x8xf32>
    %cst_78 = arith.constant dense<0.000000e+00> : vector<16x16xf32>
    %161 = tpu.matmul %158, %159, %cst_78 {dimension_numbers = #tpu.dot_dimension_numbers<[1], [1], [0], [0], [0, 0, 1, 0], [], []>} : vector<16x8xf32>, vector<16x8xf32>, vector<16x16xf32> -> vector<16x16xf32>
    %162 = arith.addf %161, %5 : vector<16x16xf32>
    %cst_79 = arith.constant dense<0xFF800000> : vector<16xf32>
    %163 = vector.multi_reduction <maximumf>, %162, %cst_79 [1] : vector<16x16xf32> to vector<16xf32>
    %164 = vector.shape_cast %163 : vector<16xf32> to vector<16x1xf32>
    %165 = vector.broadcast %164 : vector<16x1xf32> to vector<16x16xf32>
    %166 = arith.subf %162, %165 : vector<16x16xf32>
    %167 = math.exp %166 : vector<16x16xf32>
    %168 = arith.mulf %167, %1 : vector<16x16xf32>
    %cst_80 = arith.constant dense<0.000000e+00> : vector<16xf32>
    %169 = vector.multi_reduction <add>, %168, %cst_80 [1] : vector<16x16xf32> to vector<16xf32>
    %170 = vector.shape_cast %169 : vector<16xf32> to vector<16x1xf32>
    %cst_81 = arith.constant 0.000000e+00 : f32
    %171 = vector.broadcast %cst_81 : f32 to vector<16x1xf32>
    %172 = arith.cmpf ogt, %170, %171 : vector<16x1xf32>
    %cst_82 = arith.constant 1.000000e+00 : f32
    %173 = vector.broadcast %cst_82 : f32 to vector<16x1xf32>
    %174 = arith.select %172, %170, %173 : vector<16x1xi1>, vector<16x1xf32>
    %175 = vector.broadcast %174 : vector<16x1xf32> to vector<16x16xf32>
    %176 = arith.divf %168, %175 : vector<16x16xf32>
    %cst_83 = arith.constant dense<0.000000e+00> : vector<16x8xf32>
    %177 = tpu.matmul %176, %160, %cst_83 {dimension_numbers = #tpu.dot_dimension_numbers<[1], [0], [0], [1], [0, 0, 1, 1], [], []>} : vector<16x16xf32>, vector<16x8xf32>, vector<16x8xf32> -> vector<16x8xf32>
    %c0_84 = arith.constant 0 : index
    %c0_85 = arith.constant 0 : index
    %178 = vector.load %arg27[%c0_84, %c0_85] : memref<16x32xf32, #tpu.memory_space<vmem>>, vector<16x8xf32>
    tpu.vector_store %arg27[%c0_84, %c0_85], %177 {strides = array<i32>} : memref<16x32xf32, #tpu.memory_space<vmem>>, vector<16x8xf32>,
    %179 = vector.extract_strided_slice %151 {offsets = [0, 8], sizes = [16, 8], strides = [1, 1]} : vector<16x32xf32> to vector<16x8xf32>
    %180 = vector.extract_strided_slice %153 {offsets = [0, 8], sizes = [16, 8], strides = [1, 1]} : vector<16x32xf32> to vector<16x8xf32>
    %181 = vector.extract_strided_slice %155 {offsets = [0, 8], sizes = [16, 8], strides = [1, 1]} : vector<16x32xf32> to vector<16x8xf32>
    %cst_86 = arith.constant dense<0.000000e+00> : vector<16x16xf32>
    %182 = tpu.matmul %179, %180, %cst_86 {dimension_numbers = #tpu.dot_dimension_numbers<[1], [1], [0], [0], [0, 0, 1, 0], [], []>} : vector<16x8xf32>, vector<16x8xf32>, vector<16x16xf32> -> vector<16x16xf32>
    %183 = arith.addf %182, %5 : vector<16x16xf32>
    %cst_87 = arith.constant dense<0xFF800000> : vector<16xf32>
    %184 = vector.multi_reduction <maximumf>, %183, %cst_87 [1] : vector<16x16xf32> to vector<16xf32>
    %185 = vector.shape_cast %184 : vector<16xf32> to vector<16x1xf32>
    %186 = vector.broadcast %185 : vector<16x1xf32> to vector<16x16xf32>
    %187 = arith.subf %183, %186 : vector<16x16xf32>
    %188 = math.exp %187 : vector<16x16xf32>
    %189 = arith.mulf %188, %1 : vector<16x16xf32>
    %cst_88 = arith.constant dense<0.000000e+00> : vector<16xf32>
    %190 = vector.multi_reduction <add>, %189, %cst_88 [1] : vector<16x16xf32> to vector<16xf32>
    %191 = vector.shape_cast %190 : vector<16xf32> to vector<16x1xf32>
    %cst_89 = arith.constant 0.000000e+00 : f32
    %192 = vector.broadcast %cst_89 : f32 to vector<16x1xf32>
    %193 = arith.cmpf ogt, %191, %192 : vector<16x1xf32>
    %cst_90 = arith.constant 1.000000e+00 : f32
    %194 = vector.broadcast %cst_90 : f32 to vector<16x1xf32>
    %195 = arith.select %193, %191, %194 : vector<16x1xi1>, vector<16x1xf32>
    %196 = vector.broadcast %195 : vector<16x1xf32> to vector<16x16xf32>
    %197 = arith.divf %189, %196 : vector<16x16xf32>
    %cst_91 = arith.constant dense<0.000000e+00> : vector<16x8xf32>
    %198 = tpu.matmul %197, %181, %cst_91 {dimension_numbers = #tpu.dot_dimension_numbers<[1], [0], [0], [1], [0, 0, 1, 1], [], []>} : vector<16x16xf32>, vector<16x8xf32>, vector<16x8xf32> -> vector<16x8xf32>
    %c0_92 = arith.constant 0 : index
    %c8_93 = arith.constant 8 : index
    %199 = vector.load %arg27[%c0_92, %c8_93] : memref<16x32xf32, #tpu.memory_space<vmem>>, vector<16x8xf32>
    tpu.vector_store %arg27[%c0_92, %c8_93], %198 {strides = array<i32>} : memref<16x32xf32, #tpu.memory_space<vmem>>, vector<16x8xf32>,
    %200 = vector.extract_strided_slice %151 {offsets = [0, 16], sizes = [16, 8], strides = [1, 1]} : vector<16x32xf32> to vector<16x8xf32>
    %201 = vector.extract_strided_slice %153 {offsets = [0, 16], sizes = [16, 8], strides = [1, 1]} : vector<16x32xf32> to vector<16x8xf32>
    %202 = vector.extract_strided_slice %155 {offsets = [0, 16], sizes = [16, 8], strides = [1, 1]} : vector<16x32xf32> to vector<16x8xf32>
    %cst_94 = arith.constant dense<0.000000e+00> : vector<16x16xf32>
    %203 = tpu.matmul %200, %201, %cst_94 {dimension_numbers = #tpu.dot_dimension_numbers<[1], [1], [0], [0], [0, 0, 1, 0], [], []>} : vector<16x8xf32>, vector<16x8xf32>, vector<16x16xf32> -> vector<16x16xf32>
    %204 = arith.addf %203, %5 : vector<16x16xf32>
    %cst_95 = arith.constant dense<0xFF800000> : vector<16xf32>
    %205 = vector.multi_reduction <maximumf>, %204, %cst_95 [1] : vector<16x16xf32> to vector<16xf32>
    %206 = vector.shape_cast %205 : vector<16xf32> to vector<16x1xf32>
    %207 = vector.broadcast %206 : vector<16x1xf32> to vector<16x16xf32>
    %208 = arith.subf %204, %207 : vector<16x16xf32>
    %209 = math.exp %208 : vector<16x16xf32>
    %210 = arith.mulf %209, %1 : vector<16x16xf32>
    %cst_96 = arith.constant dense<0.000000e+00> : vector<16xf32>
    %211 = vector.multi_reduction <add>, %210, %cst_96 [1] : vector<16x16xf32> to vector<16xf32>
    %212 = vector.shape_cast %211 : vector<16xf32> to vector<16x1xf32>
    %cst_97 = arith.constant 0.000000e+00 : f32
    %213 = vector.broadcast %cst_97 : f32 to vector<16x1xf32>
    %214 = arith.cmpf ogt, %212, %213 : vector<16x1xf32>
    %cst_98 = arith.constant 1.000000e+00 : f32
    %215 = vector.broadcast %cst_98 : f32 to vector<16x1xf32>
    %216 = arith.select %214, %212, %215 : vector<16x1xi1>, vector<16x1xf32>
    %217 = vector.broadcast %216 : vector<16x1xf32> to vector<16x16xf32>
    %218 = arith.divf %210, %217 : vector<16x16xf32>
    %cst_99 = arith.constant dense<0.000000e+00> : vector<16x8xf32>
    %219 = tpu.matmul %218, %202, %cst_99 {dimension_numbers = #tpu.dot_dimension_numbers<[1], [0], [0], [1], [0, 0, 1, 1], [], []>} : vector<16x16xf32>, vector<16x8xf32>, vector<16x8xf32> -> vector<16x8xf32>
    %c0_100 = arith.constant 0 : index
    %c16_101 = arith.constant 16 : index
    %220 = vector.load %arg27[%c0_100, %c16_101] : memref<16x32xf32, #tpu.memory_space<vmem>>, vector<16x8xf32>
    tpu.vector_store %arg27[%c0_100, %c16_101], %219 {strides = array<i32>} : memref<16x32xf32, #tpu.memory_space<vmem>>, vector<16x8xf32>,
    %221 = vector.extract_strided_slice %151 {offsets = [0, 24], sizes = [16, 8], strides = [1, 1]} : vector<16x32xf32> to vector<16x8xf32>
    %222 = vector.extract_strided_slice %153 {offsets = [0, 24], sizes = [16, 8], strides = [1, 1]} : vector<16x32xf32> to vector<16x8xf32>
    %223 = vector.extract_strided_slice %155 {offsets = [0, 24], sizes = [16, 8], strides = [1, 1]} : vector<16x32xf32> to vector<16x8xf32>
    %cst_102 = arith.constant dense<0.000000e+00> : vector<16x16xf32>
    %224 = tpu.matmul %221, %222, %cst_102 {dimension_numbers = #tpu.dot_dimension_numbers<[1], [1], [0], [0], [0, 0, 1, 0], [], []>} : vector<16x8xf32>, vector<16x8xf32>, vector<16x16xf32> -> vector<16x16xf32>
    %225 = arith.addf %224, %5 : vector<16x16xf32>
    %cst_103 = arith.constant dense<0xFF800000> : vector<16xf32>
    %226 = vector.multi_reduction <maximumf>, %225, %cst_103 [1] : vector<16x16xf32> to vector<16xf32>
    %227 = vector.shape_cast %226 : vector<16xf32> to vector<16x1xf32>
    %228 = vector.broadcast %227 : vector<16x1xf32> to vector<16x16xf32>
    %229 = arith.subf %225, %228 : vector<16x16xf32>
    %230 = math.exp %229 : vector<16x16xf32>
    %231 = arith.mulf %230, %1 : vector<16x16xf32>
    %cst_104 = arith.constant dense<0.000000e+00> : vector<16xf32>
    %232 = vector.multi_reduction <add>, %231, %cst_104 [1] : vector<16x16xf32> to vector<16xf32>
    %233 = vector.shape_cast %232 : vector<16xf32> to vector<16x1xf32>
    %cst_105 = arith.constant 0.000000e+00 : f32
    %234 = vector.broadcast %cst_105 : f32 to vector<16x1xf32>
    %235 = arith.cmpf ogt, %233, %234 : vector<16x1xf32>
    %cst_106 = arith.constant 1.000000e+00 : f32
    %236 = vector.broadcast %cst_106 : f32 to vector<16x1xf32>
    %237 = arith.select %235, %233, %236 : vector<16x1xi1>, vector<16x1xf32>
    %238 = vector.broadcast %237 : vector<16x1xf32> to vector<16x16xf32>
    %239 = arith.divf %231, %238 : vector<16x16xf32>
    %cst_107 = arith.constant dense<0.000000e+00> : vector<16x8xf32>
    %240 = tpu.matmul %239, %223, %cst_107 {dimension_numbers = #tpu.dot_dimension_numbers<[1], [0], [0], [1], [0, 0, 1, 1], [], []>} : vector<16x16xf32>, vector<16x8xf32>, vector<16x8xf32> -> vector<16x8xf32>
    %c0_108 = arith.constant 0 : index
    %c24_109 = arith.constant 24 : index
    %241 = vector.load %arg27[%c0_108, %c24_109] : memref<16x32xf32, #tpu.memory_space<vmem>>, vector<16x8xf32>
    tpu.vector_store %arg27[%c0_108, %c24_109], %240 {strides = array<i32>} : memref<16x32xf32, #tpu.memory_space<vmem>>, vector<16x8xf32>,
    %c0_110 = arith.constant 0 : index
    %c0_111 = arith.constant 0 : index
    %242 = vector.load %arg27[%c0_110, %c0_111] : memref<16x32xf32, #tpu.memory_space<vmem>>, vector<16x32xf32>
    %243 = arith.addf %242, %157 : vector<16x32xf32>
    %c0_112 = arith.constant 0 : index
    %c0_113 = arith.constant 0 : index
    %244 = vector.load %arg14[%c0_112, %c0_113] : memref<1x32xf32, #tpu.memory_space<vmem>>, vector<1x32xf32>
    %c0_114 = arith.constant 0 : index
    %c0_115 = arith.constant 0 : index
    %245 = vector.load %arg15[%c0_114, %c0_115] : memref<1x32xf32, #tpu.memory_space<vmem>>, vector<1x32xf32>
    %cst_116 = arith.constant dense<0.000000e+00> : vector<16xf32>
    %246 = vector.multi_reduction <add>, %243, %cst_116 [1] : vector<16x32xf32> to vector<16xf32>
    %247 = vector.shape_cast %246 : vector<16xf32> to vector<16x1xf32>
    %cst_117 = arith.constant 3.200000e+01 : f32
    %248 = vector.broadcast %cst_117 : f32 to vector<16x1xf32>
    %249 = arith.divf %247, %248 : vector<16x1xf32>
    %250 = vector.broadcast %249 : vector<16x1xf32> to vector<16x32xf32>
    %251 = arith.subf %243, %250 : vector<16x32xf32>
    %252 = arith.mulf %251, %251 : vector<16x32xf32>
    %cst_118 = arith.constant dense<0.000000e+00> : vector<16xf32>
    %253 = vector.multi_reduction <add>, %252, %cst_118 [1] : vector<16x32xf32> to vector<16xf32>
    %254 = vector.shape_cast %253 : vector<16xf32> to vector<16x1xf32>
    %cst_119 = arith.constant 3.200000e+01 : f32
    %255 = vector.broadcast %cst_119 : f32 to vector<16x1xf32>
    %256 = arith.divf %254, %255 : vector<16x1xf32>
    %257 = vector.broadcast %249 : vector<16x1xf32> to vector<16x32xf32>
    %258 = arith.subf %243, %257 : vector<16x32xf32>
    %cst_120 = arith.constant 9.99999974E-6 : f32
    %259 = vector.broadcast %cst_120 : f32 to vector<16x1xf32>
    %260 = arith.addf %256, %259 : vector<16x1xf32>
    %261 = math.rsqrt %260 : vector<16x1xf32>
    %262 = vector.broadcast %261 : vector<16x1xf32> to vector<16x32xf32>
    %263 = arith.mulf %258, %262 : vector<16x32xf32>
    %264 = vector.broadcast %244 : vector<1x32xf32> to vector<16x32xf32>
    %265 = arith.mulf %263, %264 : vector<16x32xf32>
    %266 = vector.broadcast %245 : vector<1x32xf32> to vector<16x32xf32>
    %267 = arith.addf %265, %266 : vector<16x32xf32>
    %cst_121 = arith.constant 1.000000e-01 : f32
    %268 = vector.broadcast %cst_121 : f32 to vector<16x32xf32>
    %269 = arith.mulf %268, %149 : vector<16x32xf32>
    %270 = arith.addf %267, %269 : vector<16x32xf32>
    %cst_122 = arith.constant 0.000000e+00 : f32
    %271 = vector.broadcast %cst_122 : f32 to vector<16x32xf32>
    %272 = arith.maximumf %270, %271 : vector<16x32xf32>
    %c0_123 = arith.constant 0 : index
    %c0_124 = arith.constant 0 : index
    %273 = vector.load %arg16[%c0_123, %c0_124] : memref<32x32xf32, #tpu.memory_space<vmem>>, vector<32x32xf32>
    %cst_125 = arith.constant dense<0.000000e+00> : vector<16x32xf32>
    %274 = tpu.matmul %272, %273, %cst_125 {dimension_numbers = #tpu.dot_dimension_numbers<[1], [0], [0], [1], [0, 0, 1, 1], [], []>} : vector<16x32xf32>, vector<32x32xf32>, vector<16x32xf32> -> vector<16x32xf32>
    %c0_126 = arith.constant 0 : index
    %c0_127 = arith.constant 0 : index
    %275 = vector.load %arg17[%c0_126, %c0_127] : memref<32x32xf32, #tpu.memory_space<vmem>>, vector<32x32xf32>
    %cst_128 = arith.constant dense<0.000000e+00> : vector<16x32xf32>
    %276 = tpu.matmul %272, %275, %cst_128 {dimension_numbers = #tpu.dot_dimension_numbers<[1], [0], [0], [1], [0, 0, 1, 1], [], []>} : vector<16x32xf32>, vector<32x32xf32>, vector<16x32xf32> -> vector<16x32xf32>
    %c0_129 = arith.constant 0 : index
    %c0_130 = arith.constant 0 : index
    %277 = vector.load %arg18[%c0_129, %c0_130] : memref<32x32xf32, #tpu.memory_space<vmem>>, vector<32x32xf32>
    %cst_131 = arith.constant dense<0.000000e+00> : vector<16x32xf32>
    %278 = tpu.matmul %272, %277, %cst_131 {dimension_numbers = #tpu.dot_dimension_numbers<[1], [0], [0], [1], [0, 0, 1, 1], [], []>} : vector<16x32xf32>, vector<32x32xf32>, vector<16x32xf32> -> vector<16x32xf32>
    %c0_132 = arith.constant 0 : index
    %c0_133 = arith.constant 0 : index
    %279 = vector.load %arg19[%c0_132, %c0_133] : memref<32x32xf32, #tpu.memory_space<vmem>>, vector<32x32xf32>
    %cst_134 = arith.constant dense<0.000000e+00> : vector<16x32xf32>
    %280 = tpu.matmul %272, %279, %cst_134 {dimension_numbers = #tpu.dot_dimension_numbers<[1], [0], [0], [1], [0, 0, 1, 1], [], []>} : vector<16x32xf32>, vector<32x32xf32>, vector<16x32xf32> -> vector<16x32xf32>
    %cst_135 = arith.constant dense<0.000000e+00> : vector<16x16xf32>
    %281 = tpu.matmul %274, %276, %cst_135 {dimension_numbers = #tpu.dot_dimension_numbers<[1], [1], [0], [0], [0, 0, 1, 0], [], []>} : vector<16x32xf32>, vector<16x32xf32>, vector<16x16xf32> -> vector<16x16xf32>
    %282 = arith.addf %281, %5 : vector<16x16xf32>
    %cst_136 = arith.constant dense<0xFF800000> : vector<16xf32>
    %283 = vector.multi_reduction <maximumf>, %282, %cst_136 [1] : vector<16x16xf32> to vector<16xf32>
    %284 = vector.shape_cast %283 : vector<16xf32> to vector<16x1xf32>
    %285 = vector.broadcast %284 : vector<16x1xf32> to vector<16x16xf32>
    %286 = arith.subf %282, %285 : vector<16x16xf32>
    %287 = math.exp %286 : vector<16x16xf32>
    %288 = arith.mulf %287, %1 : vector<16x16xf32>
    %cst_137 = arith.constant dense<0.000000e+00> : vector<16xf32>
    %289 = vector.multi_reduction <add>, %288, %cst_137 [1] : vector<16x16xf32> to vector<16xf32>
    %290 = vector.shape_cast %289 : vector<16xf32> to vector<16x1xf32>
    %cst_138 = arith.constant 0.000000e+00 : f32
    %291 = vector.broadcast %cst_138 : f32 to vector<16x1xf32>
    %292 = arith.cmpf ogt, %290, %291 : vector<16x1xf32>
    %cst_139 = arith.constant 1.000000e+00 : f32
    %293 = vector.broadcast %cst_139 : f32 to vector<16x1xf32>
    %294 = arith.select %292, %290, %293 : vector<16x1xi1>, vector<16x1xf32>
    %295 = vector.broadcast %294 : vector<16x1xf32> to vector<16x16xf32>
    %296 = arith.divf %288, %295 : vector<16x16xf32>
    %cst_140 = arith.constant dense<0.000000e+00> : vector<16x32xf32>
    %297 = tpu.matmul %296, %278, %cst_140 {dimension_numbers = #tpu.dot_dimension_numbers<[1], [0], [0], [1], [0, 0, 1, 1], [], []>} : vector<16x16xf32>, vector<16x32xf32>, vector<16x32xf32> -> vector<16x32xf32>
    %c0_141 = arith.constant 0 : index
    %c0_142 = arith.constant 0 : index
    %298 = vector.load %arg27[%c0_141, %c0_142] : memref<16x32xf32, #tpu.memory_space<vmem>>, vector<16x32xf32>
    tpu.vector_store %arg27[%c0_141, %c0_142], %297 {strides = array<i32>} : memref<16x32xf32, #tpu.memory_space<vmem>>, vector<16x32xf32>,
    %c0_143 = arith.constant 0 : index
    %c0_144 = arith.constant 0 : index
    %299 = vector.load %arg27[%c0_143, %c0_144] : memref<16x32xf32, #tpu.memory_space<vmem>>, vector<16x32xf32>
    %300 = arith.addf %299, %280 : vector<16x32xf32>
    %c0_145 = arith.constant 0 : index
    %c0_146 = arith.constant 0 : index
    %301 = vector.load %arg20[%c0_145, %c0_146] : memref<1x32xf32, #tpu.memory_space<vmem>>, vector<1x32xf32>
    %c0_147 = arith.constant 0 : index
    %c0_148 = arith.constant 0 : index
    %302 = vector.load %arg21[%c0_147, %c0_148] : memref<1x32xf32, #tpu.memory_space<vmem>>, vector<1x32xf32>
    %cst_149 = arith.constant dense<0.000000e+00> : vector<16xf32>
    %303 = vector.multi_reduction <add>, %300, %cst_149 [1] : vector<16x32xf32> to vector<16xf32>
    %304 = vector.shape_cast %303 : vector<16xf32> to vector<16x1xf32>
    %cst_150 = arith.constant 3.200000e+01 : f32
    %305 = vector.broadcast %cst_150 : f32 to vector<16x1xf32>
    %306 = arith.divf %304, %305 : vector<16x1xf32>
    %307 = vector.broadcast %306 : vector<16x1xf32> to vector<16x32xf32>
    %308 = arith.subf %300, %307 : vector<16x32xf32>
    %309 = arith.mulf %308, %308 : vector<16x32xf32>
    %cst_151 = arith.constant dense<0.000000e+00> : vector<16xf32>
    %310 = vector.multi_reduction <add>, %309, %cst_151 [1] : vector<16x32xf32> to vector<16xf32>
    %311 = vector.shape_cast %310 : vector<16xf32> to vector<16x1xf32>
    %cst_152 = arith.constant 3.200000e+01 : f32
    %312 = vector.broadcast %cst_152 : f32 to vector<16x1xf32>
    %313 = arith.divf %311, %312 : vector<16x1xf32>
    %314 = vector.broadcast %306 : vector<16x1xf32> to vector<16x32xf32>
    %315 = arith.subf %300, %314 : vector<16x32xf32>
    %cst_153 = arith.constant 9.99999974E-6 : f32
    %316 = vector.broadcast %cst_153 : f32 to vector<16x1xf32>
    %317 = arith.addf %313, %316 : vector<16x1xf32>
    %318 = math.rsqrt %317 : vector<16x1xf32>
    %319 = vector.broadcast %318 : vector<16x1xf32> to vector<16x32xf32>
    %320 = arith.mulf %315, %319 : vector<16x32xf32>
    %321 = vector.broadcast %301 : vector<1x32xf32> to vector<16x32xf32>
    %322 = arith.mulf %320, %321 : vector<16x32xf32>
    %323 = vector.broadcast %302 : vector<1x32xf32> to vector<16x32xf32>
    %324 = arith.addf %322, %323 : vector<16x32xf32>
    %cst_154 = arith.constant 1.000000e-01 : f32
    %325 = vector.broadcast %cst_154 : f32 to vector<16x32xf32>
    %326 = arith.mulf %325, %272 : vector<16x32xf32>
    %327 = arith.addf %324, %326 : vector<16x32xf32>
    %c0_155 = arith.constant 0 : index
    %c0_156 = arith.constant 0 : index
    %328 = vector.load %arg22[%c0_155, %c0_156] : memref<32x32xf32, #tpu.memory_space<vmem>>, vector<32x32xf32>
    %cst_157 = arith.constant dense<0.000000e+00> : vector<16x32xf32>
    %329 = tpu.matmul %327, %328, %cst_157 {dimension_numbers = #tpu.dot_dimension_numbers<[1], [0], [0], [1], [0, 0, 1, 1], [], []>} : vector<16x32xf32>, vector<32x32xf32>, vector<16x32xf32> -> vector<16x32xf32>
    %c0_158 = arith.constant 0 : index
    %c0_159 = arith.constant 0 : index
    %330 = vector.load %arg23[%c0_158, %c0_159] : memref<1x32xf32, #tpu.memory_space<vmem>>, vector<1x32xf32>
    %331 = vector.broadcast %330 : vector<1x32xf32> to vector<16x32xf32>
    %332 = arith.addf %329, %331 : vector<16x32xf32>
    %cst_160 = arith.constant 0.000000e+00 : f32
    %333 = vector.broadcast %cst_160 : f32 to vector<16x32xf32>
    %334 = arith.maximumf %332, %333 : vector<16x32xf32>
    %c0_161 = arith.constant 0 : index
    %c0_162 = arith.constant 0 : index
    %335 = vector.load %arg24[%c0_161, %c0_162] : memref<32x2xf32, #tpu.memory_space<vmem>>, vector<32x2xf32>
    %cst_163 = arith.constant dense<0.000000e+00> : vector<16x2xf32>
    %336 = tpu.matmul %334, %335, %cst_163 {dimension_numbers = #tpu.dot_dimension_numbers<[1], [0], [0], [1], [0, 0, 1, 1], [], []>} : vector<16x32xf32>, vector<32x2xf32>, vector<16x2xf32> -> vector<16x2xf32>
    %c0_164 = arith.constant 0 : index
    %c0_165 = arith.constant 0 : index
    %337 = vector.load %arg25[%c0_164, %c0_165] : memref<1x2xf32, #tpu.memory_space<vmem>>, vector<1x2xf32>
    %338 = vector.broadcast %337 : vector<1x2xf32> to vector<16x2xf32>
    %339 = arith.addf %336, %338 : vector<16x2xf32>
    %c0_166 = arith.constant 0 : index
    %c0_167 = arith.constant 0 : index
    %340 = vector.load %arg26[%c0_166, %c0_167] : memref<16x2xf32, #tpu.memory_space<vmem>>, vector<16x2xf32>
    tpu.vector_store %arg26[%c0_166, %c0_167], %339 {strides = array<i32>} : memref<16x2xf32, #tpu.memory_space<vmem>>, vector<16x2xf32>,
    return
  }
}

</mosaic_0001>

<bundles_post_ra>
// kernel: tpu_custom_call.1
= control target key start
LH: loop header
LB: loop body
LE: loop exit
PB: predicated region body
PF: predicated region fallthrough
CT: control target
= control target key end

     0   :  { %s3631_s0 = inlined_call_operand.hbm [shape: f32[16,12], index: 0, kind: input, shape index: {}]   ;;  %s3632_s1 = inlined_call_operand.hbm [shape: f32[16,16], index: 1, kind: input, shape index: {}]   ;;  %s3633_s2 = inlined_call_operand.vmem [shape: f32[1,12], index: 2, kind: input, shape index: {}]   ;;  %s3634_s3 = inlined_call_operand.vmem [shape: f32[1,12], index: 3, kind: input, shape index: {}]   ;;  %s3635_s4 = inlined_call_operand.hbm [shape: f32[12,32], index: 4, kind: input, shape index: {}]   ;;  %s3636_s5 = inlined_call_operand.hbm [shape: f32[12,32], index: 5, kind: input, shape index: {}]   ;;  %s3637_s6 = inlined_call_operand.hbm [shape: f32[12,32], index: 6, kind: input, shape index: {}]   ;;  %s3638_s7 = inlined_call_operand.hbm [shape: f32[12,32], index: 7, kind: input, shape index: {}]   ;;  %s3639_s8 = inlined_call_operand.vmem [shape: f32[1,32], index: 8, kind: input, shape index: {}]   ;;  %s3640_s9 = inlined_call_operand.vmem [shape: f32[1,32], index: 9, kind: input, shape index: {}]   ;;  %s3641_s10 = inlined_call_operand.vmem [shape: f32[32,32], index: 10, kind: input, shape index: {}]   ;;  %s3642_s11 = inlined_call_operand.hbm [shape: f32[32,32], index: 11, kind: input, shape index: {}]   ;;  %s3643_s12 = inlined_call_operand.hbm [shape: f32[32,32], index: 12, kind: input, shape index: {}]   ;;  %s3644_s13 = inlined_call_operand.hbm [shape: f32[32,32], index: 13, kind: input, shape index: {}]   ;;  %s3645_s14 = inlined_call_operand.vmem [shape: f32[1,32], index: 14, kind: input, shape index: {}]   ;;  %s3646_s15 = inlined_call_operand.vmem [shape: f32[1,32], index: 15, kind: input, shape index: {}]   ;;  %s3647_s16 = inlined_call_operand.hbm [shape: f32[32,32], index: 16, kind: input, shape index: {}]   ;;  %s3648_s17 = inlined_call_operand.hbm [shape: f32[32,32], index: 17, kind: input, shape index: {}]   ;;  %s3649_s18 = inlined_call_operand.hbm [shape: f32[32,32], index: 18, kind: input, shape index: {}]   ;;  %s3650_s19 = inlined_call_operand.hbm [shape: f32[32,32], index: 19, kind: input, shape index: {}]   ;;  %s3651_s20 = inlined_call_operand.vmem [shape: f32[1,32], index: 20, kind: input, shape index: {}]   ;;  %s3652_s21 = inlined_call_operand.vmem [shape: f32[1,32], index: 21, kind: input, shape index: {}]   ;;  %s3653_s22 = inlined_call_operand.hbm [shape: f32[32,32], index: 22, kind: input, shape index: {}]   ;;  %s3654_s23 = inlined_call_operand.vmem [shape: f32[1,32], index: 23, kind: input, shape index: {}]   ;;  %s3655_s24 = inlined_call_operand.vmem [shape: f32[32,2], index: 24, kind: input, shape index: {}]   ;;  %s3656_s25 = inlined_call_operand.vmem [shape: f32[1,2], index: 25, kind: input, shape index: {}]   ;;  %s3657_s26 = inlined_call_operand.vmem [shape: f32[16,2], index: 26, kind: output, shape index: {}]  }
   0x1   :  { %3660 = sst [smem:[#allocation33_spill]] %s3631_s0 }
   0x2   :  { %3661 = sst [smem:[#allocation34_spill]] %s3632_s1 }
   0x3   :  { %3662 = sst [smem:[#allocation35_spill]] %s3633_s2 }
   0x4   :  { %3663 = sst [smem:[#allocation36_spill]] %s3634_s3 }
   0x5   :  { %3664 = sst [smem:[#allocation37_spill]] %s3635_s4 }
   0x6   :  { %3665 = sst [smem:[#allocation38_spill]] %s3636_s5 }
   0x7   :  { %3666 = sst [smem:[#allocation39_spill]] %s3637_s6 }
   0x8   :  { %3667 = sst [smem:[#allocation40_spill]] %s3638_s7 }
   0x9   :  { %3668 = sst [smem:[#allocation41_spill]] %s3639_s8 }
   0xa   :  { %3669 = sst [smem:[#allocation42_spill]] %s3640_s9 }
   0xb   :  { %3670 = sst [smem:[#allocation43_spill]] %s3641_s10 }
   0xc   :  { %3671 = sst [smem:[#allocation44_spill]] %s3657_s26 }
   0xd   :  { %31 = vsyncpa [#allocation4], 0 }
   0xe   :  { %32 = vsyncpa [#allocation6], 0 }
   0xf   :  { %33 = vsyncpa [#allocation9], 0 }
  0x10   :  { %34 = vsyncpa [#allocation12], 0 }
  0x11   :  { %35 = vsyncpa [#allocation15], 0 }
  0x12   :  { %36 = vsyncpa [#allocation18], 0 }
  0x13   :  { %37 = vsyncpa [#allocation21], 0 }
  0x14   :  { %38 = vsyncpa [#allocation24], 0  ;;  %s3672_s7 = sld [smem:[#allocation34_spill]]  ;;  %s2805_s8 = smov [#allocation5]  }
  0x15   :  { %s58_s4 = sshll.u32 %s2805_s8, 4  ;;  %s3673_s9 = sld [smem:[#allocation38_spill]]  ;;  %s59_s4 = int_to_ptr.vmem [resolvable:$true] %s58_s4 }
  0x16   :  { %s2806_s2 = smov 128   ;;  %s2807_s5 = smov 8  }
  0x17   :  { %s2808_s10 = smov [#allocation8]   ;;  %s3674_s3 = sld [smem:[#allocation40_spill]] }
  0x18   :  { %s88_s6 = sshll.u32 %s2808_s10, 4  ;;  %s144_s0 = sshll.u32 %s3643_s12, 4  ;;  %s89_s6 = int_to_ptr.vmem [resolvable:$true] %s88_s6  ;;  %s145_s0 = int_to_ptr.hbm [resolvable:$true] %s144_s0 }
  0x19   :  { %s174_s27 = sshll.u32 %s3647_s16, 4  ;;  %s2813_s1 = smov [#allocation3]   ;;  %s175_s27 = int_to_ptr.hbm [resolvable:$true] %s174_s27 }
  0x1a   :  { %s56_s28 = sshll.u32 %s3672_s7, 4  ;;  %s45_s12 = sshll.u32 %s2813_s1, 4  ;;  %s57_s28 = int_to_ptr.hbm [resolvable:$true] %s56_s28  ;;  %s46_s12 = int_to_ptr.vmem [resolvable:$true] %s45_s12 }
  0x1b   :  { %s86_s30 = sshll.u32 %s3673_s9, 4  ;;  %s2809_s9 = smov [#allocation11]   ;;  %s87_s30 = int_to_ptr.hbm [resolvable:$true] %s86_s30 }
  0x1c   :  { %64 = dma.hbm_to_vmem [thread:$0]  %s57_s28, 256, %s59_s4, [#allocation6], %s2806_s2, %s2806_s2, %s2807_s5  }
  0x1d   :  { %s112_s7 = sshll.u32 %s3674_s3, 4  ;;  %s114_s26 = sshll.u32 %s2809_s9, 4  ;;  %s113_s7 = int_to_ptr.hbm [resolvable:$true] %s112_s7  ;;  %s115_s26 = int_to_ptr.vmem [resolvable:$true] %s114_s26 }
  0x1e   :  { %94 = dma.hbm_to_vmem [thread:$0]  %s87_s30, 256, %s89_s6, [#allocation9], %s2806_s2, %s2806_s2, %s2807_s5  }
  0x1f   :  { %120 = dma.hbm_to_vmem [thread:$0]  %s113_s7, 256, %s115_s26, [#allocation12], %s2806_s2, %s2806_s2, %s2807_s5  }
  0x20   :  { %s2810_s28 = smov [#allocation14]   ;;  %s200_s6 = sshll.u32 %s3649_s18, 4  ;;  %s201_s6 = int_to_ptr.hbm [resolvable:$true] %s200_s6 }
  0x21   :  { %s146_s4 = sshll.u32 %s2810_s28, 4  ;;  %s2811_s3 = smov [#allocation17]   ;;  %s147_s4 = int_to_ptr.vmem [resolvable:$true] %s146_s4 }
  0x22   :  { %152 = dma.hbm_to_vmem [thread:$0]  %s145_s0, 512, %s147_s4, [#allocation15], %s2806_s2, %s2806_s2, %s2807_s5  }
  0x23   :  { %s176_s8 = sshll.u32 %s2811_s3, 4  ;;  %s2812_s26 = smov [#allocation20]   ;;  %s177_s8 = int_to_ptr.vmem [resolvable:$true] %s176_s8 }
  0x24   :  { %182 = dma.hbm_to_vmem [thread:$0]  %s175_s27, 512, %s177_s8, [#allocation18], %s2806_s2, %s2806_s2, %s2807_s5  }
  0x25   :  { %s202_s16 = sshll.u32 %s2812_s26, 4  ;;  %s3675_s9 = sld [smem:[#allocation33_spill]]  ;;  %s203_s16 = int_to_ptr.vmem [resolvable:$true] %s202_s16 }
  0x26   :  { %208 = dma.hbm_to_vmem [thread:$0]  %s201_s6, 512, %s203_s16, [#allocation21], %s2806_s2, %s2806_s2, %s2807_s5  }
  0x27   :  { %s3676_s4 = sld [smem:[#allocation37_spill]]  ;;  %s2814_s27 = smov [#allocation7]  }
  0x28   :  { %s75_s30 = sshll.u32 %s2814_s27, 4  ;;  %s3677_s26 = sld [smem:[#allocation39_spill]]  ;;  %s76_s30 = int_to_ptr.vmem [resolvable:$true] %s75_s30 }
  0x29   :  { %s131_s29 = sshll.u32 %s3642_s11, 4  ;;  %s187_s27 = sshll.u32 %s3648_s17, 4  ;;  %s132_s29 = int_to_ptr.hbm [resolvable:$true] %s131_s29  ;;  %s188_s27 = int_to_ptr.hbm [resolvable:$true] %s187_s27 }
  0x2a   :  { %s2818_s8 = smov [#allocation19]   ;;  %s213_s6 = sshll.u32 %s3650_s19, 4  ;;  %s214_s6 = int_to_ptr.hbm [resolvable:$true] %s213_s6 }
  0x2b   :  { %s43_s28 = sshll.u32 %s3675_s9, 4  ;;  %s2815_s9 = smov [#allocation10]   ;;  %s44_s28 = int_to_ptr.hbm [resolvable:$true] %s43_s28 }
  0x2c   :  { %51 = dma.hbm_to_vmem [thread:$0]  %s44_s28, 256, %s46_s12, [#allocation4], %s2806_s2, %s2806_s2, %s2807_s5  }
  0x2d   :  { %s73_s10 = sshll.u32 %s3676_s4, 4  ;;  %s101_s18 = sshll.u32 %s2815_s9, 4  ;;  %s74_s10 = int_to_ptr.hbm [resolvable:$true] %s73_s10  ;;  %s102_s18 = int_to_ptr.vmem [resolvable:$true] %s101_s18 }
  0x2e   :  { %s99_s7 = sshll.u32 %s3677_s26, 4  ;;  %s2816_s28 = smov [#allocation13]   ;;  %s100_s7 = int_to_ptr.hbm [resolvable:$true] %s99_s7 }
  0x2f   :  { %81 = dma.hbm_to_vmem [thread:$0]  %s74_s10, 256, %s76_s30, [#allocation6], %s2806_s2, %s2806_s2, %s2807_s5  }
  0x30   :  { %107 = dma.hbm_to_vmem [thread:$0]  %s100_s7, 256, %s102_s18, [#allocation9], %s2806_s2, %s2806_s2, %s2807_s5  }
  0x31   :  { %s133_s0 = sshll.u32 %s2816_s28, 4  ;;  %s157_s12 = sshll.u32 %s3644_s13, 4  ;;  %s134_s0 = int_to_ptr.vmem [resolvable:$true] %s133_s0  ;;  %s158_s12 = int_to_ptr.hbm [resolvable:$true] %s157_s12 }
  0x32   :  { %139 = dma.hbm_to_vmem [thread:$0]  %s132_s29, 512, %s134_s0, [#allocation12], %s2806_s2, %s2806_s2, %s2807_s5  }
  0x33   :  { %s2817_s30 = smov [#allocation16]   ;;  %s189_s13 = sshll.u32 %s2818_s8, 4  ;;  %s190_s13 = int_to_ptr.vmem [resolvable:$true] %s189_s13 }
  0x34   :  { %s159_s3 = sshll.u32 %s2817_s30, 4  ;;  %s230_s29 = sshll.u32 %s3653_s22, 4  ;;  %s160_s3 = int_to_ptr.vmem [resolvable:$true] %s159_s3  ;;  %s231_s29 = int_to_ptr.hbm [resolvable:$true] %s230_s29 }
  0x35   :  { %165 = dma.hbm_to_vmem [thread:$0]  %s158_s12, 512, %s160_s3, [#allocation15], %s2806_s2, %s2806_s2, %s2807_s5  }
  0x36   :  { %195 = dma.hbm_to_vmem [thread:$0]  %s188_s27, 512, %s190_s13, [#allocation18], %s2806_s2, %s2806_s2, %s2807_s5  }
  0x37   :  { %s2819_s9 = smov [#allocation22]   ;;  %s2820_s28 = smov [#allocation23]  }
  0x38   :  { %s215_s18 = sshll.u32 %s2819_s9, 4  ;;  %s232_s19 = sshll.u32 %s2820_s28, 4  ;;  %s216_s18 = int_to_ptr.vmem [resolvable:$true] %s215_s18  ;;  %s233_s19 = int_to_ptr.vmem [resolvable:$true] %s232_s19 }
  0x39   :  { %221 = dma.hbm_to_vmem [thread:$0]  %s214_s6, 512, %s216_s18, [#allocation21], %s2806_s2, %s2806_s2, %s2807_s5  }
  0x3a   :  { %238 = dma.hbm_to_vmem [thread:$0]  %s231_s29, 512, %s233_s19, [#allocation24], %s2806_s2, %s2806_s2, %s2807_s5  }
  0x3b   :  { %2789 = dma.done.wait [#allocation4], 256  }
  0x3c   :  { %2790 = vsyncadd [#allocation4], 4294967040 }
  0x3d   :  { %2791 = dma.done.wait [#allocation6], 512  }
  0x3e   :  { %2792 = vsyncadd [#allocation6], 4294966784 }
  0x3f   :  { %2793 = dma.done.wait [#allocation9], 512  }
  0x40   :  { %2794 = vsyncadd [#allocation9], 4294966784 }
  0x41   :  { %2795 = dma.done.wait [#allocation12], 768  }
  0x42   :  { %2796 = vsyncadd [#allocation12], 4294966528 }
  0x43   :  { %2797 = dma.done.wait [#allocation15], 1024  }
  0x44   :  { %2798 = vsyncadd [#allocation15], 4294966272 }
  0x45   :  { %2799 = dma.done.wait [#allocation18], 1024  }
  0x46   :  { %2800 = vsyncadd [#allocation18], 4294966272 }
  0x47   :  { %2801 = dma.done.wait [#allocation21], 1024  }
  0x48   :  { %2802 = vsyncadd [#allocation21], 4294966272 }
  0x49   :  { %2803 = dma.done.wait [#allocation24], 512  }
  0x4a   :  { %2804 = vsyncadd [#allocation24], 4294966784  ;;  %vm311_vm0 = vcmask 97280   ;;  %v301_v0 = vld [vmem:[#allocation3] sm:$0xff]  ;;  %v302_v2 = vld [vmem:[#allocation3 + $0x8] sm:$0xff]  ;;  %v2821_v4 = vmov 12.0  }
  0x4b   :  { %v312_v1 = vsel %vm311_vm0, %v301_v0, 0.0  ;;  %v315_v3 = vsel %vm311_vm0, %v302_v2, 0.0  ;;  %2359 = vrcp.f32 %v2821_v4  ;;  %v374_v21 = vld [vmem:[#allocation7 + $0x8] sm:$0xf]  ;;  %vm381_vm2 = vcmask 1043456   ;;  %v373_v25 = vld [vmem:[#allocation7] sm:$0xff] }
  0x4c   :  { %313 = vadd.xlane.f32.xlu0 %v312_v1  ;;  %v409_v22 = vld [vmem:[#allocation8 + $0x8] sm:$0xf]  ;;  %2210 = vmatpush.msk.msra.mxu0 %vm381_vm2, %v374_v21  ;;  %v437_v23 = vld [vmem:[#allocation10 + $0x8] sm:$0xf]  ;;  %v408_v26 = vld [vmem:[#allocation8] sm:$0xff]  ;;  %s3678_s0 = sld [smem:[#allocation35_spill]] }
  0x4d   :  { %2213 = vmatpush.msk.msra.mxu1 %vm381_vm2, %v409_v22  ;;  %v465_v24 = vld [vmem:[#allocation11 + $0x8] sm:$0xf]  ;;  %2216 = vmatpush.msk.msra.mxu2 %vm381_vm2, %v437_v23  ;;  %v436_v27 = vld [vmem:[#allocation10] sm:$0xff]  ;;  %v464_v28 = vld [vmem:[#allocation11] sm:$0xff]  ;;  %s3679_s12 = sld [smem:[#allocation36_spill]]  ;;  %s2822_s11 = smov 120  }
  0x4e   :  { %2219 = vmatpush.msk.msra.mxu3 %vm381_vm2, %v465_v24  ;;  %400 = vmatpush.msra.mxu0 %v373_v25  ;;  %vm492_vm9 = vcmask 64512   ;;  %s2823_s10 = smov 112   ;;  %s2824_s27 = smov 104   ;;  %vm528_vm10 = vcmask 130048  }
  0x4f   :  { %428 = vmatpush.msra.mxu1 %v408_v26  ;;  %456 = vmatpush.msra.mxu2 %v436_v27  ;;  %s2825_s30 = smov 16   ;;  %s2826_s3 = smov 24  }
  0x50   :  { %484 = vmatpush.msra.mxu3 %v464_v28  ;;  %s3682_s26 = sld [smem:[#allocation43_spill]] }
  0x51   :  { %v2360_v5 = vpop.eup %2359  ;;  %s3683_s19 = sld [smem:[#allocation41_spill]] }
  0x52   :  { %v319_v6 = vmul.f32 12.0, %v2360_v5  ;;  %vm323_vm1 = vweird.f32 %v2360_v5  ;;  %v2349_v43 = vld [vmem:[%s3678_s0] ss:$0 sm:$0xff]  ;;  %s3684_s0 = sld [smem:[#allocation42_spill]] }
  0x53   :  { %v2350_v47 = vld [vmem:[%s3679_s12] ss:$0 sm:$0xff] }
  0x54   :  { %316 = vadd.xlane.f32.xlu0 %v315_v3  ;;  %v320_v7 = vsub.f32 1.0, %v319_v6 }
  0x56   :  { %v321_v8 = vmul.f32 %v2360_v5, %v320_v7 }
  0x58   :  { %v322_v9 = vadd.f32 %v2360_v5, %v321_v8  ;;  %v3094_v8 = vld [vmem:[#allocation5] sm:$0xff] }
  0x5a   :  { %v324_v10 = vsel %vm323_vm1, %v2360_v5, %v322_v9 }
  0xbf   :  { %v314_v11 = vpop.xlane.xlu0 %313 }
  0xc0   :  { %v325_v12 = vmul.f32 %v324_v10, %v314_v11 }
  0xc2   :  { %v327_v13 = vsub.f32 %v301_v0, %v325_v12 }
  0xc4   :  { %v329_v14 = vmul.f32 %v327_v13, %v327_v13 }
  0xc6   :  { %v331_v15 = vsel %vm311_vm0, %v329_v14, 0.0 }
  0xc7   :  { %332 = vadd.xlane.f32.xlu1 %v331_v15  ;;  %v317_v16 = vpop.xlane.xlu0 %316 }
  0xc8   :  { %v326_v17 = vmul.f32 %v324_v10, %v317_v16 }
  0xca   :  { %v328_v18 = vsub.f32 %v302_v2, %v326_v17  ;;  %v3106_v17 = vld [vmem:[#allocation5 + $0x8] sm:$0xff] }
  0xcc   :  { %v330_v19 = vmul.f32 %v328_v18, %v328_v18 }
  0xce   :  { %v334_v20 = vsel %vm311_vm0, %v330_v19, 0.0 }
  0xcf   :  { %335 = vadd.xlane.f32.xlu1 %v334_v20 }
 0x13a   :  { %v333_v29 = vpop.xlane.xlu1 %332 }
 0x13b   :  { %v337_v30 = vmul.f32 %v333_v29, %v324_v10 }
 0x13d   :  { %v339_v31 = vadd.f32 1e-05, %v337_v30 }
 0x13f   :  { %2361 = vrsqrt.f32 %v339_v31  ;;  %vm347_vm4 = vweird.f32 %v339_v31 }
 0x142   :  { %v336_v32 = vpop.xlane.xlu1 %335 }
 0x143   :  { %v338_v33 = vmul.f32 %v336_v32, %v324_v10  ;;  %v2208_v10 = vadd.f32 -1.0, %v3094_v8 }
 0x145   :  { %v2362_v34 = vpop.eup %2361  ;;  %v340_v35 = vadd.f32 1e-05, %v338_v33  ;;  %v3100_v11 = vmul.f32 1e+30, %v2208_v10 }
 0x146   :  { %v342_v36 = vmul.f32 %v2362_v34, %v339_v31  ;;  %vm348_vm3 = vweird.f32 %v2362_v34 }
 0x147   :  { %2363 = vrsqrt.f32 %v340_v35  ;;  %vm349_vm5 = vmor %vm347_vm4, %vm348_vm3  ;;  %vm357_vm7 = vweird.f32 %v340_v35 }
 0x148   :  { %v343_v37 = vmul.f32 %v2362_v34, %v342_v36 }
 0x14a   :  { %v344_v38 = vmul.f32 0.5, %v343_v37 }
 0x14c   :  { %v345_v39 = vsub.f32 1.5, %v344_v38 }
 0x14d   :  { %v2364_v40 = vpop.eup %2363 }
 0x14e   :  { %v346_v41 = vmul.f32 %v2362_v34, %v345_v39  ;;  %v352_v42 = vmul.f32 %v2364_v40, %v340_v35  ;;  %vm358_vm6 = vweird.f32 %v2364_v40 }
 0x14f   :  { %vm359_vm8 = vmor %vm357_vm7, %vm358_vm6 }
 0x150   :  { %v350_v44 = vsel %vm349_vm5, %v2362_v34, %v346_v41  ;;  %v353_v45 = vmul.f32 %v2364_v40, %v352_v42 }
 0x151   :  { %v361_v46 = vmul.f32 %v350_v44, %v327_v13 }
 0x152   :  { %v354_v48 = vmul.f32 0.5, %v353_v45 }
 0x153   :  { %v366_v49 = vmul.f32 %v2349_v43, %v361_v46 }
 0x154   :  { %v355_v50 = vsub.f32 1.5, %v354_v48 }
 0x155   :  { %v371_v51 = vadd.f32 %v2350_v47, %v366_v49 }
 0x156   :  { %v356_v52 = vmul.f32 %v2364_v40, %v355_v50 }
 0x157   :  { %2211 = vmatmul.msk.f32.vlgmr.msra.gmra.mxu0 %vm311_vm0, %v371_v51  ;;  %2214 = vmatmul.msk.f32.vlgmr.msra.gmra.mxu1 %vm311_vm0, %v371_v51 }
 0x158   :  { %v360_v53 = vsel %vm359_vm8, %v2364_v40, %v356_v52  ;;  %2217 = vmatmul.msk.f32.vlgmr.msra.gmra.mxu2 %vm311_vm0, %v371_v51  ;;  %2220 = vmatmul.msk.f32.vlgmr.msra.gmra.mxu3 %vm311_vm0, %v371_v51 }
 0x159   :  { %v362_v54 = vmul.f32 %v360_v53, %v328_v18  ;;  %v2209_v18 = vadd.f32 -1.0, %v3106_v17 }
 0x15b   :  { %v367_v55 = vmul.f32 %v2349_v43, %v362_v54  ;;  %v3110_v21 = vmul.f32 1e+30, %v2209_v18 }
 0x15d   :  { %v372_v56 = vadd.f32 %v2350_v47, %v367_v55 }
 0x15f   :  { %2212 = vmatmul.msk.f32.gmra.mxu0 %vm311_vm0, %v372_v56  ;;  %2215 = vmatmul.msk.f32.gmra.mxu1 %vm311_vm0, %v372_v56 }
 0x160   :  { %2218 = vmatmul.msk.f32.gmra.mxu2 %vm311_vm0, %v372_v56  ;;  %2221 = vmatmul.msk.f32.gmra.mxu3 %vm311_vm0, %v372_v56 }
 0x1d4   :  { %v402_v57 = vpop.f32.mrf.mxu0  ;;  %v430_v58 = vpop.f32.mrf.mxu1 }
 0x1d5   :  { %618 = vrot.lane.b32.xlu2 %v430_v58, %s2822_s11  ;;  %614 = vrot.lane.b32.xlu0 %v402_v57, %s2822_s11 }
 0x1db   :  { %v3067_v59 = vpop.f32.mrf.mxu2 }
 0x1dc   :  { %v405_v60 = vpop.f32.mrf.mxu0  ;;  %v433_v61 = vpop.f32.mrf.mxu1 }
 0x1dd   :  { %761 = vrot.lane.b32.xlu0 %v433_v61, %s2823_s10  ;;  %620 = vrot.lane.b32.xlu2 %v433_v61, %s2822_s11 }
 0x1de   :  { %2222 = vmatpush.xpose.msk.msrb.mxu0 %vm492_vm9, %v433_v61  ;;  %616 = vrot.lane.b32.xlu1 %v405_v60, %s2822_s11 }
 0x1e2   :  { %2223 = vmatpush.xpose.msk.msrb.mxu0 %vm492_vm9, %v430_v58 }
 0x1e3   :  { %v3074_v62 = vpop.f32.mrf.mxu2 }
 0x1e4   :  { %603 = vmatpush.msrb.mxu1 %v3074_v62 }
 0x1e5   :  { %2224 = vmatmul.msk.f32.vlgmr.msrb.gmra.mxu0 %vm492_vm9, %v402_v57  ;;  %755 = vrot.lane.b32.xlu0 %v402_v57, %s2823_s10 }
 0x1e6   :  { %604 = vmatpush.msrb.mxu1 %v3067_v59  ;;  %898 = vrot.lane.b32.xlu2 %v430_v58, %s2824_s27 }
 0x1e7   :  { %896 = vrot.lane.b32.xlu1 %v405_v60, %s2824_s27 }
 0x1ed   :  { %2225 = vmatmul.msk.f32.gmra.mxu0 %vm492_vm9, %v405_v60 }
 0x1ee   :  { %900 = vrot.lane.b32.xlu2 %v433_v61, %s2824_s27 }
 0x1f6   :  { %894 = vrot.lane.b32.xlu2 %v402_v57, %s2824_s27 }
 0x1fe   :  { %759 = vrot.lane.b32.xlu2 %v430_v58, %s2823_s10 }
 0x206   :  { %757 = vrot.lane.b32.xlu2 %v405_v60, %s2823_s10 }
 0x22f   :  { %v619_v63 = vpop.permute.xlu2 %618 }
 0x237   :  { %v621_v0 = vpop.permute.xlu2 %620 }
 0x238   :  { %2228 = vmatpush.xpose.msk.msrb.mxu2 %vm492_vm9, %v621_v0 }
 0x23c   :  { %2229 = vmatpush.xpose.msk.msrb.mxu2 %vm492_vm9, %v619_v63 }
 0x240   :  { %v899_v1 = vpop.permute.xlu2 %898 }
 0x247   :  { %v615_v2 = vpop.permute.xlu0 %614 }
 0x248   :  { %v901_v3 = vpop.permute.xlu2 %900  ;;  %2230 = vmatmul.msk.f32.vlgmr.msrb.gmra.mxu2 %vm492_vm9, %v615_v2 }
 0x249   :  { %2240 = vmatpush.xpose.msk.msra.mxu2 %vm492_vm9, %v901_v3 }
 0x24d   :  { %2241 = vmatpush.xpose.msk.msra.mxu2 %vm492_vm9, %v899_v1 }
 0x24f   :  { %v762_v4 = vpop.permute.xlu0 %761 }
 0x250   :  { %v895_v5 = vpop.permute.xlu2 %894  ;;  %v617_v6 = vpop.permute.xlu1 %616  ;;  %2234 = vmatpush.xpose.msk.msra.mxu0 %vm492_vm9, %v762_v4 }
 0x251   :  { %2231 = vmatmul.msk.f32.gmra.mxu2 %vm492_vm9, %v617_v6 }
 0x257   :  { %v756_v9 = vpop.permute.xlu0 %755 }
 0x258   :  { %v760_v7 = vpop.permute.xlu2 %759 }
 0x259   :  { %2235 = vmatpush.xpose.msk.msra.mxu0 %vm492_vm9, %v760_v7  ;;  %2242 = vmatmul.msk.f32.vlgmr.msra.gmra.mxu2 %vm492_vm9, %v895_v5  ;;  %v897_v12 = vpop.permute.xlu1 %896 }
 0x25c   :  { %2236 = vmatmul.msk.f32.vlgmr.msra.gmra.mxu0 %vm492_vm9, %v756_v9 }
 0x260   :  { %v758_v14 = vpop.permute.xlu2 %757 }
 0x261   :  { %2243 = vmatmul.msk.f32.gmra.mxu2 %vm492_vm9, %v897_v12 }
 0x262   :  { %v522_v13 = vpop.f32.mrf.mxu0 }
 0x263   :  { %v523_v15 = vadd.f32 %v522_v13, %v3100_v11 }
 0x264   :  { %2237 = vmatmul.msk.f32.gmra.mxu0 %vm492_vm9, %v758_v14 }
 0x265   :  { %v529_v16 = vsel %vm528_vm10, %v523_v15, -inf }
 0x266   :  { %530 = vmax.xlane.f32.xlu0 %v529_v16 }
 0x26a   :  { %v525_v23 = vpop.f32.mrf.mxu0 }
 0x26b   :  { %v526_v24 = vadd.f32 %v525_v23, %v3110_v21 }
 0x26d   :  { %v532_v27 = vsel %vm528_vm10, %v526_v24, -inf }
 0x2cb   :  { %v647_v19 = vpop.f32.mrf.mxu2 }
 0x2cc   :  { %v648_v20 = vadd.f32 %v647_v19, %v3100_v11 }
 0x2ce   :  { %v653_v22 = vsel %vm528_vm10, %v648_v20, -inf }
 0x2cf   :  { %654 = vmax.xlane.f32.xlu1 %v653_v22 }
 0x2d4   :  { %v650_v25 = vpop.f32.mrf.mxu2 }
 0x2d5   :  { %v651_v26 = vadd.f32 %v650_v25, %v3110_v21 }
 0x2d7   :  { %v656_v28 = vsel %vm528_vm10, %v651_v26, -inf  ;;  %533 = vmax.xlane.f32.xlu1 %v532_v27 }
 0x2d8   :  { %657 = vmax.xlane.f32.xlu2 %v656_v28 }
 0x2d9   :  { %v788_v29 = vpop.f32.mrf.mxu0  ;;  %v531_v30 = vpop.xlane.xlu0 %530 }
 0x2da   :  { %v535_v31 = vsub.f32 %v523_v15, %v531_v30  ;;  %v789_v32 = vadd.f32 %v788_v29, %v3100_v11 }
 0x2dc   :  { %v927_v33 = vpop.f32.mrf.mxu2  ;;  %v537_v35 = vmul.f32 1.442695, %v535_v31  ;;  %v794_v37 = vsel %vm528_vm10, %v789_v32, -inf }
 0x2dd   :  { %v928_v34 = vadd.f32 %v927_v33, %v3100_v11 }
 0x2de   :  { %2365 = vpow2.f32 %v537_v35 }
 0x2df   :  { %v933_v36 = vsel %vm528_vm10, %v928_v34, -inf }
 0x2e0   :  { %934 = vmax.xlane.f32.xlu0 %v933_v36  ;;  %795 = vmax.xlane.f32.xlu2 %v794_v37 }
 0x2e1   :  { %v791_v38 = vpop.f32.mrf.mxu0 }
 0x2e2   :  { %v792_v39 = vadd.f32 %v791_v38, %v3110_v21 }
 0x2e4   :  { %v930_v40 = vpop.f32.mrf.mxu2  ;;  %v797_v43 = vsel %vm528_vm10, %v792_v39, -inf  ;;  %v2366_v44 = vpop.eup %2365 }
 0x2e5   :  { %v931_v41 = vadd.f32 %v930_v40, %v3110_v21  ;;  %v3126_v45 = vmul.f32 %v2366_v44, %v3094_v8 }
 0x2e7   :  { %v936_v42 = vsel %vm528_vm10, %v931_v41, -inf  ;;  %v543_v46 = vsel %vm528_vm10, %v3126_v45, 0.0 }
 0x2e8   :  { %937 = vmax.xlane.f32.xlu1 %v936_v42  ;;  %798 = vmax.xlane.f32.xlu0 %v797_v43 }
 0x2f0   :  { %544 = vadd.xlane.f32.xlu1 %v543_v46 }
 0x342   :  { %v655_v47 = vpop.xlane.xlu1 %654 }
 0x343   :  { %v659_v49 = vsub.f32 %v648_v20, %v655_v47 }
 0x345   :  { %v661_v55 = vmul.f32 1.442695, %v659_v49 }
 0x34a   :  { %v534_v48 = vpop.xlane.xlu1 %533 }
 0x34b   :  { %v658_v50 = vpop.xlane.xlu2 %657  ;;  %v536_v51 = vsub.f32 %v526_v24, %v534_v48 }
 0x34c   :  { %v660_v52 = vsub.f32 %v651_v26, %v658_v50 }
 0x34d   :  { %v539_v53 = vmul.f32 1.442695, %v536_v51 }
 0x34e   :  { %v663_v54 = vmul.f32 1.442695, %v660_v52 }
 0x34f   :  { %2367 = vpow2.f32 %v539_v53 }
 0x350   :  { %2369 = vpow2.f32 %v663_v54 }
 0x351   :  { %2371 = vpow2.f32 %v661_v55 }
 0x353   :  { %v796_v56 = vpop.xlane.xlu2 %795  ;;  %v935_v57 = vpop.xlane.xlu0 %934 }
 0x354   :  { %v800_v58 = vsub.f32 %v789_v32, %v796_v56  ;;  %v939_v60 = vsub.f32 %v928_v34, %v935_v57 }
 0x355   :  { %v2368_v61 = vpop.eup %2367 }
 0x356   :  { %v2370_v63 = vpop.eup %2369  ;;  %v941_v0 = vmul.f32 1.442695, %v939_v60  ;;  %v3131_v1 = vmul.f32 %v2368_v61, %v3106_v17  ;;  %v802_v2 = vmul.f32 1.442695, %v800_v58 }
 0x357   :  { %v3134_v3 = vmul.f32 %v2370_v63, %v3106_v17  ;;  %v2372_v5 = vpop.eup %2371 }
 0x358   :  { %v546_v4 = vsel %vm528_vm10, %v3131_v1, 0.0  ;;  %2373 = vpow2.f32 %v941_v0  ;;  %v3141_v13 = vmul.f32 %v2372_v5, %v3094_v8 }
 0x359   :  { %v670_v6 = vsel %vm528_vm10, %v3134_v3, 0.0  ;;  %547 = vadd.xlane.f32.xlu2 %v546_v4  ;;  %2375 = vpow2.f32 %v802_v2 }
 0x35a   :  { %671 = vadd.xlane.f32.xlu0 %v670_v6  ;;  %v667_v18 = vsel %vm528_vm10, %v3141_v13, 0.0 }
 0x35b   :  { %v938_v7 = vpop.xlane.xlu1 %937  ;;  %v799_v9 = vpop.xlane.xlu0 %798 }
 0x35c   :  { %v940_v10 = vsub.f32 %v931_v41, %v938_v7  ;;  %v801_v12 = vsub.f32 %v792_v39, %v799_v9 }
 0x35e   :  { %v943_v14 = vmul.f32 1.442695, %v940_v10  ;;  %v2374_v15 = vpop.eup %2373  ;;  %v804_v16 = vmul.f32 1.442695, %v801_v12 }
 0x35f   :  { %v3146_v19 = vmul.f32 %v2374_v15, %v3094_v8  ;;  %v2376_v20 = vpop.eup %2375 }
 0x360   :  { %2377 = vpow2.f32 %v943_v14  ;;  %v3151_v24 = vmul.f32 %v2376_v20, %v3094_v8  ;;  %v2319_v8 = vpack.i.bf16 %v3067_v59, %v3074_v62 }
 0x361   :  { %668 = vadd.xlane.f32.xlu2 %v667_v18  ;;  %v947_v22 = vsel %vm528_vm10, %v3146_v19, 0.0  ;;  %2379 = vpow2.f32 %v804_v16 }
 0x362   :  { %948 = vadd.xlane.f32.xlu1 %v947_v22  ;;  %v808_v28 = vsel %vm528_vm10, %v3151_v24, 0.0 }
 0x363   :  { %v545_v23 = vpop.xlane.xlu1 %544 }
 0x364   :  { %vm549_vm11 = vcmp.gt.f32.partialorder %v545_v23, 0.0 }
 0x365   :  { %v551_v25 = vsel %vm549_vm11, %v545_v23, 1.0 }
 0x366   :  { %v2378_v26 = vpop.eup %2377  ;;  %2381 = vrcp.f32 %v551_v25  ;;  %v564_v35 = vand.u32 2147483648, %v551_v25  ;;  %v562_v38 = vand.u32 2147483647, %v551_v25  ;;  %vm558_vm13 = vweird.f32 %v551_v25 }
 0x367   :  { %v3154_v27 = vmul.f32 %v2378_v26, %v3106_v17  ;;  %v2380_v29 = vpop.eup %2379 }
 0x368   :  { %v3163_v32 = vmul.f32 %v2380_v29, %v3106_v17  ;;  %v565_v40 = vor.u32 1.1754944e-38, %v564_v35  ;;  %vm563_vm15 = vcmp.eq.f32.partialorder %v562_v38, 8.507059e+37 }
 0x369   :  { %809 = vadd.xlane.f32.xlu2 %v808_v28  ;;  %v950_v30 = vsel %vm528_vm10, %v3154_v27, 0.0 }
 0x36a   :  { %951 = vadd.xlane.f32.xlu1 %v950_v30  ;;  %v811_v36 = vsel %vm528_vm10, %v3163_v32, 0.0 }
 0x36c   :  { %v2382_v31 = vpop.eup %2381 }
 0x36d   :  { %v554_v33 = vmul.f32 %v2382_v31, %v551_v25  ;;  %vm559_vm12 = vweird.f32 %v2382_v31 }
 0x36e   :  { %2320 = vrot.lane.b32.xlu0 %v2319_v8, %s2822_s11  ;;  %vm560_vm14 = vmor %vm558_vm13, %vm559_vm12 }
 0x36f   :  { %v555_v34 = vsub.f32 1.0, %v554_v33 }
 0x371   :  { %v556_v37 = vmul.f32 %v2382_v31, %v555_v34  ;;  %812 = vadd.xlane.f32.xlu2 %v811_v36 }
 0x373   :  { %v557_v39 = vadd.f32 %v2382_v31, %v556_v37 }
 0x375   :  { %v561_v59 = vsel %vm560_vm14, %v2382_v31, %v557_v39 }
 0x376   :  { %v566_v62 = vsel %vm563_vm15, %v565_v40, %v561_v59 }
 0x377   :  { %v567_v17 = vmul.f32 %v566_v62, %v3126_v45 }
 0x379   :  { %2226 = vmatmul.msk.f32.vlgmr.msrb.gmra.mxu1 %vm528_vm10, %v567_v17 }
 0x383   :  { %2325 = vrot.lane.b32.xlu1 %v2319_v8, %s2824_s27 }
 0x389   :  { %2330 = vrot.lane.b32.xlu2 %v2319_v8, %s2823_s10 }
 0x3cc   :  { %v548_v41 = vpop.xlane.xlu2 %547 }
 0x3cd   :  { %vm550_vm0 = vcmp.gt.f32.partialorder %v548_v41, 0.0  ;;  %v672_v42 = vpop.xlane.xlu0 %671 }
 0x3ce   :  { %v552_v43 = vsel %vm550_vm0, %v548_v41, 1.0  ;;  %vm674_vm1 = vcmp.gt.f32.partialorder %v672_v42, 0.0 }
 0x3cf   :  { %2383 = vrcp.f32 %v552_v43  ;;  %v3172_v44 = vsel %vm674_vm1, %v672_v42, 1.0  ;;  %v579_v54 = vand.u32 2147483648, %v552_v43  ;;  %v577_v56 = vand.u32 2147483647, %v552_v43 }
 0x3d0   :  { %2385 = vrcp.f32 %v3172_v44  ;;  %vm573_vm5 = vweird.f32 %v552_v43  ;;  %v703_v30 = vand.u32 2147483648, %v3172_v44  ;;  %v701_v59 = vand.u32 2147483647, %v3172_v44 }
 0x3d1   :  { %v580_v61 = vor.u32 1.1754944e-38, %v579_v54  ;;  %vm578_vm8 = vcmp.eq.f32.partialorder %v577_v56, 8.507059e+37 }
 0x3d2   :  { %v704_v42 = vor.u32 1.1754944e-38, %v703_v30 }
 0x3d4   :  { %v669_v46 = vpop.xlane.xlu2 %668 }
 0x3d5   :  { %v2384_v47 = vpop.eup %2383  ;;  %vm673_vm2 = vcmp.gt.f32.partialorder %v669_v46, 0.0  ;;  %v949_v49 = vpop.xlane.xlu1 %948 }
 0x3d6   :  { %v569_v45 = vmul.f32 %v2384_v47, %v552_v43  ;;  %v675_v48 = vsel %vm673_vm2, %v669_v46, 1.0  ;;  %v3175_v50 = vpop.eup %2385  ;;  %vm953_vm3 = vcmp.gt.f32.partialorder %v949_v49, 0.0  ;;  %vm574_vm4 = vweird.f32 %v2384_v47 }
 0x3d7   :  { %2387 = vrcp.f32 %v675_v48  ;;  %v3177_v52 = vsel %vm953_vm3, %v949_v49, 1.0  ;;  %v693_v55 = vmul.f32 %v3175_v50, %v3172_v44  ;;  %vm575_vm6 = vmor %vm573_vm5, %vm574_vm4  ;;  %v688_v12 = vand.u32 2147483648, %v675_v48 }
 0x3d8   :  { %v570_v51 = vsub.f32 1.0, %v569_v45  ;;  %2389 = vrcp.f32 %v3177_v52  ;;  %v686_v22 = vand.u32 2147483647, %v675_v48  ;;  %vm682_vm13 = vweird.f32 %v675_v48 }
 0x3d9   :  { %v694_v5 = vsub.f32 1.0, %v693_v55  ;;  %vm698_vm0 = vweird.f32 %v3175_v50  ;;  %vm697_vm2 = vweird.f32 %v3172_v44 }
 0x3da   :  { %v571_v53 = vmul.f32 %v2384_v47, %v570_v51  ;;  %vm687_vm1 = vcmp.eq.f32.partialorder %v686_v22, 8.507059e+37  ;;  %vm3209_vm3 = vmor %vm697_vm2, %vm698_vm0 }
 0x3db   :  { %v695_v20 = vmul.f32 %v3175_v50, %v694_v5 }
 0x3dc   :  { %v810_v57 = vpop.xlane.xlu2 %809  ;;  %v572_v58 = vadd.f32 %v2384_v47, %v571_v53 }
 0x3dd   :  { %v2388_v60 = vpop.eup %2387  ;;  %vm814_vm7 = vcmp.gt.f32.partialorder %v810_v57, 0.0  ;;  %v952_v2 = vpop.xlane.xlu1 %951  ;;  %v696_v34 = vadd.f32 %v3175_v50, %v695_v20 }
 0x3de   :  { %v678_v63 = vmul.f32 %v2388_v60, %v675_v48  ;;  %v3182_v0 = vsel %vm814_vm7, %v810_v57, 1.0  ;;  %v576_v4 = vsel %vm575_vm6, %v2384_v47, %v572_v58  ;;  %vm954_vm11 = vcmp.gt.f32.partialorder %v952_v2, 0.0  ;;  %v3185_v10 = vpop.eup %2389 }
 0x3df   :  { %2391 = vrcp.f32 %v3182_v0  ;;  %v581_v9 = vsel %vm578_vm8, %v580_v61, %v576_v4  ;;  %vm683_vm12 = vweird.f32 %v2388_v60  ;;  %v3187_v15 = vsel %vm954_vm11, %v952_v2, 1.0 }
 0x3e0   :  { %v679_v6 = vsub.f32 1.0, %v678_v63  ;;  %v2321_v7 = vpop.permute.xlu0 %2320  ;;  %v582_v16 = vmul.f32 %v581_v9, %v3131_v1  ;;  %2393 = vrcp.f32 %v3187_v15  ;;  %v958_v25 = vmul.f32 %v3185_v10, %v3177_v52  ;;  %vm684_vm14 = vmor %vm682_vm13, %vm683_vm12 }
 0x3e1   :  { %v2322_v18 = vunpack.i.l.bf16 %v2321_v7  ;;  %v2323_v28 = vunpack.i.h.bf16 %v2321_v7  ;;  %v689_v1 = vor.u32 1.1754944e-38, %v688_v12  ;;  %v829_v39 = vand.u32 2147483648, %v3182_v0 }
 0x3e2   :  { %v680_v14 = vmul.f32 %v2388_v60, %v679_v6  ;;  %2227 = vmatmul.msk.f32.gmra.mxu1 %vm528_vm10, %v582_v16  ;;  %v959_v35 = vsub.f32 1.0, %v958_v25  ;;  %v827_v41 = vand.u32 2147483647, %v3182_v0  ;;  %v700_v43 = vsel %vm3209_vm3, %v3175_v50, %v696_v34 }
 0x3e3   :  { %735 = vmatpush.msrb.mxu3 %v2322_v18  ;;  %vm823_vm5 = vweird.f32 %v3182_v0  ;;  %v830_v48 = vor.u32 1.1754944e-38, %v829_v39  ;;  %vm702_vm7 = vcmp.eq.f32.partialorder %v701_v59, 8.507059e+37  ;;  %vm963_vm11 = vweird.f32 %v3185_v10 }
 0x3e4   :  { %v681_v23 = vadd.f32 %v2388_v60, %v680_v14  ;;  %v813_v26 = vpop.xlane.xlu2 %812  ;;  %v960_v46 = vmul.f32 %v3185_v10, %v959_v35  ;;  %vm828_vm8 = vcmp.eq.f32.partialorder %v827_v41, 8.507059e+37  ;;  %v705_v54 = vsel %vm702_vm7, %v704_v42, %v700_v43 }
 0x3e5   :  { %v2392_v29 = vpop.eup %2391  ;;  %vm815_vm15 = vcmp.gt.f32.partialorder %v813_v26, 0.0  ;;  %736 = vmatpush.msrb.mxu3 %v2323_v28  ;;  %vm962_vm12 = vweird.f32 %v3177_v52  ;;  %v968_v61 = vand.u32 2147483648, %v3177_v52  ;;  %v966_v2 = vand.u32 2147483647, %v3177_v52 }
 0x3e6   :  { %v819_v31 = vmul.f32 %v2392_v29, %v3182_v0  ;;  %v3198_v8 = vsel %vm815_vm15, %v813_v26, 1.0  ;;  %v685_v33 = vsel %vm684_vm14, %v2388_v60, %v681_v23  ;;  %v3203_v38 = vpop.eup %2393  ;;  %vm824_vm4 = vweird.f32 %v2392_v29  ;;  %vm964_vm14 = vmor %vm962_vm12, %vm963_vm11 }
 0x3e7   :  { %2395 = vrcp.f32 %v3198_v8  ;;  %v690_v37 = vsel %vm687_vm1, %v689_v1, %v685_v33  ;;  %v973_v44 = vmul.f32 %v3203_v38, %v3187_v15  ;;  %vm825_vm6 = vmor %vm823_vm5, %vm824_vm4  ;;  %v961_v56 = vadd.f32 %v3185_v10, %v960_v46 }
 0x3e8   :  { %v820_v36 = vsub.f32 1.0, %v819_v31  ;;  %v691_v40 = vmul.f32 %v690_v37, %v3141_v13  ;;  %v844_v63 = vand.u32 2147483648, %v3198_v8  ;;  %v706_v0 = vmul.f32 %v705_v54, %v3134_v3 }
 0x3e9   :  { %v974_v58 = vsub.f32 1.0, %v973_v44  ;;  %v842_v5 = vand.u32 2147483647, %v3198_v8  ;;  %vm838_vm15 = vweird.f32 %v3198_v8  ;;  %v969_v7 = vor.u32 1.1754944e-38, %v968_v61 }
 0x3ea   :  { %v821_v17 = vmul.f32 %v2392_v29, %v820_v36  ;;  %2232 = vmatmul.msk.f32.vlgmr.msrb.gmra.mxu3 %vm528_vm10, %v691_v40  ;;  %v845_v52 = vor.u32 1.1754944e-38, %v844_v63  ;;  %vm967_vm1 = vcmp.eq.f32.partialorder %v966_v2, 8.507059e+37  ;;  %vm978_vm3 = vweird.f32 %v3203_v38  ;;  %v1106_v2 = vld [vmem:[%s3682_s26 + $0x18] sm:$0xff] }
 0x3eb   :  { %v975_v6 = vmul.f32 %v3203_v38, %v974_v58  ;;  %vm843_vm2 = vcmp.eq.f32.partialorder %v842_v5, 8.507059e+37  ;;  %v983_v23 = vand.u32 2147483648, %v3187_v15  ;;  %vm977_vm4 = vweird.f32 %v3187_v15  ;;  %v1166_v5 = vld [vmem:[#allocation14 + $0x18] sm:$0xff]  ;;  %1125 = vmatpush.msrb.mxu0 %v1106_v2 }
 0x3ec   :  { %v822_v13 = vadd.f32 %v2392_v29, %v821_v17  ;;  %v2331_v47 = vpop.permute.xlu2 %2330  ;;  %v981_v28 = vand.u32 2147483647, %v3187_v15  ;;  %vm979_vm5 = vmor %vm977_vm4, %vm978_vm3  ;;  %vm752_vm7 = vcmask 130112   ;;  %vm1030_vm11 = vcmask 261312   ;;  %1179 = vmatpush.msrb.mxu2 %v1166_v5 }
 0x3ed   :  { %v2396_v45 = vpop.eup %2395  ;;  %v2332_v49 = vunpack.i.l.bf16 %v2331_v47  ;;  %v2333_v55 = vunpack.i.h.bf16 %v2331_v47  ;;  %v976_v22 = vadd.f32 %v3203_v38, %v975_v6  ;;  %vm1039_vm12 = vcmask 261120  }
 0x3ee   :  { %v826_v51 = vsel %vm825_vm6, %v2392_v29, %v822_v13  ;;  %v834_v53 = vmul.f32 %v2396_v45, %v3198_v8  ;;  %vm839_vm13 = vweird.f32 %v2396_v45  ;;  %v984_v29 = vor.u32 1.1754944e-38, %v983_v23  ;;  %v1136_v23 = vld [vmem:[#allocation13] sm:$0xff] }
 0x3ef   :  { %v831_v50 = vsel %vm828_vm8, %v830_v48, %v826_v51  ;;  %874 = vmatpush.msra.mxu1 %v2332_v49  ;;  %vm840_vm0 = vmor %vm838_vm15, %vm839_vm13  ;;  %vm982_vm6 = vcmp.eq.f32.partialorder %v981_v28, 8.507059e+37  ;;  %vm891_vm8 = vcmask 195712   ;;  %v2827_v44 = vmov 32.0  }
 0x3f0   :  { %v832_v57 = vmul.f32 %v831_v50, %v3151_v24  ;;  %v835_v60 = vsub.f32 1.0, %v834_v53  ;;  %v965_v24 = vsel %vm964_vm14, %v3185_v10, %v961_v56  ;;  %2397 = vrcp.f32 %v2827_v44 }
 0x3f1   :  { %875 = vmatpush.msra.mxu1 %v2333_v55  ;;  %v970_v16 = vsel %vm967_vm1, %v969_v7, %v965_v24  ;;  %v1193_v24 = vld [vmem:[#allocation16 + $0x18] sm:$0xff]  ;;  %v1138_v7 = vld [vmem:[#allocation13 + $0x10] sm:$0xff] }
 0x3f2   :  { %v836_v4 = vmul.f32 %v2396_v45, %v835_v60  ;;  %2238 = vmatmul.msk.f32.vlgmr.msra.gmra.mxu1 %vm528_vm10, %v832_v57  ;;  %2233 = vmatmul.msk.f32.gmra.mxu3 %vm528_vm10, %v706_v0  ;;  %v971_v26 = vmul.f32 %v970_v16, %v3146_v19  ;;  %v486_v19 = vpop.f32.mrf.mxu3  ;;  %v1137_v16 = vld [vmem:[#allocation13 + $0x8] sm:$0xff] }
 0x3f4   :  { %v837_v3 = vadd.f32 %v2396_v45, %v836_v4  ;;  %v1139_v4 = vld [vmem:[#allocation13 + $0x18] sm:$0xff] }
 0x3f5   :  { %v2326_v9 = vpop.permute.xlu1 %2325  ;;  %1152 = vmatpush.msrb.mxu1 %v1139_v4 }
 0x3f6   :  { %v606_v12 = vpop.f32.mrf.mxu1  ;;  %v841_v14 = vsel %vm840_vm0, %v2396_v45, %v837_v3  ;;  %v2327_v18 = vunpack.i.l.bf16 %v2326_v9  ;;  %v2328_v25 = vunpack.i.h.bf16 %v2326_v9  ;;  %v2398_v47 = vpop.eup %2397  ;;  %v1105_v3 = vld [vmem:[%s3682_s26 + $0x10] sm:$0xff] }
 0x3f7   :  { %612 = vst.msk [vmem:[#allocation2] sm:$0xff] %vm492_vm9, %v606_v12  ;;  %v846_v20 = vsel %vm843_vm2, %v845_v52, %v841_v14  ;;  %v1047_v45 = vmul.f32 32.0, %v2398_v47  ;;  %vm1051_vm13 = vweird.f32 %v2398_v47  ;;  %v1165_v52 = vld [vmem:[#allocation14 + $0x10] sm:$0xff]  ;;  %1126 = vmatpush.msrb.mxu0 %v1105_v3  ;;  %1153 = vmatpush.msrb.mxu1 %v1138_v7  ;;  %v1104_v14 = vld [vmem:[%s3682_s26 + $0x8] sm:$0xff] }
 0x3f8   :  { %v847_v10 = vmul.f32 %v846_v20, %v3163_v32  ;;  %1013 = vmatpush.msra.mxu3 %v2327_v18  ;;  %v980_v32 = vsel %vm979_vm5, %v3203_v38, %v976_v22  ;;  %v1192_v12 = vld [vmem:[#allocation16 + $0x10] sm:$0xff]  ;;  %1180 = vmatpush.msrb.mxu2 %v1165_v52  ;;  %v1164_v18 = vld [vmem:[#allocation14 + $0x8] sm:$0xff] }
 0x3f9   :  { %v985_v30 = vsel %vm982_vm6, %v984_v29, %v980_v32  ;;  %v1048_v48 = vsub.f32 1.0, %v1047_v45  ;;  %v1191_v20 = vld [vmem:[#allocation16 + $0x8] sm:$0xff]  ;;  %1127 = vmatpush.msrb.mxu0 %v1104_v14  ;;  %1154 = vmatpush.msrb.mxu1 %v1137_v16 }
 0x3fa   :  { %2239 = vmatmul.msk.f32.gmra.mxu1 %vm528_vm10, %v847_v10  ;;  %1014 = vmatpush.msra.mxu3 %v2328_v25  ;;  %v986_v1 = vmul.f32 %v985_v30, %v3154_v27  ;;  %v489_v8 = vpop.f32.mrf.mxu3  ;;  %v1103_v10 = vld [vmem:[%s3682_s26] sm:$0xff]  ;;  %v1163_v25 = vld [vmem:[#allocation14] sm:$0xff] }
 0x3fb   :  { %2244 = vmatmul.msk.f32.vlgmr.msra.gmra.mxu3 %vm528_vm10, %v971_v26  ;;  %v1049_v49 = vmul.f32 %v2398_v47, %v1048_v48  ;;  %v1190_v26 = vld [vmem:[#allocation16] sm:$0xff]  ;;  %1181 = vmatpush.msrb.mxu2 %v1164_v18 }
 0x3fc   :  { %1206 = vmatpush.msrb.mxu3 %v1193_v24  ;;  %1128 = vmatpush.msrb.mxu0 %v1103_v10 }
 0x3fd   :  { %v1050_v51 = vadd.f32 %v2398_v47, %v1049_v49  ;;  %1155 = vmatpush.msrb.mxu1 %v1136_v23  ;;  %1182 = vmatpush.msrb.mxu2 %v1163_v25 }
 0x3fe   :  { %1207 = vmatpush.msrb.mxu3 %v1192_v12 }
 0x3ff   :  { %v3267_v53 = vsel %vm1051_vm13, %v2398_v47, %v1050_v51 }
 0x400   :  { %1208 = vmatpush.msrb.mxu3 %v1191_v20 }
 0x402   :  { %1209 = vmatpush.msrb.mxu3 %v1190_v26 }
 0x403   :  { %2245 = vmatmul.msk.f32.gmra.mxu3 %vm528_vm10, %v986_v1 }
 0x45f   :  { %v609_v31 = vpop.f32.mrf.mxu1 }
 0x460   :  { %613 = vst.msk [vmem:[#allocation2 + $0x8] sm:$0xff] %vm492_vm9, %v609_v31 }
 0x46d   :  { %v738_v33 = vpop.f32.mrf.mxu3 }
 0x46f   :  { %v877_v15 = vpop.f32.mrf.mxu1 }
 0x470   :  { %885 = vrot.lane.b32.xlu0 %v877_v15, %s2825_s30 }
 0x475   :  { %v741_v34 = vpop.f32.mrf.mxu3 }
 0x476   :  { %748 = vrot.lane.b32.xlu1 %v741_v34, %s2807_s5 }
 0x477   :  { %v880_v35 = vpop.f32.mrf.mxu1 }
 0x478   :  { %887 = vrot.lane.b32.xlu2 %v880_v35, %s2825_s30  ;;  %746 = vrot.lane.b32.xlu0 %v738_v33, %s2807_s5  ;;  %v2351_v35 = vld [vmem:[%s3683_s19] ss:$0 sm:$0xff] }
 0x47e   :  { %v1016_v27 = vpop.f32.mrf.mxu3 }
 0x480   :  { %1024 = vrot.lane.b32.xlu0 %v1016_v27, %s2826_s3 }
 0x486   :  { %v1019_v36 = vpop.f32.mrf.mxu3 }
 0x488   :  { %1026 = vrot.lane.b32.xlu0 %v1019_v36, %s2826_s3 }
 0x4d2   :  { %v888_v40 = vpop.permute.xlu2 %887 }
 0x4e2   :  { %v886_v37 = vpop.permute.xlu0 %885 }
 0x4e8   :  { %v749_v38 = vpop.permute.xlu1 %748 }
 0x4e9   :  { %754 = vst.msk [vmem:[#allocation2 + $0x8] sm:$0xff] %vm752_vm7, %v749_v38  ;;  %v2352_v38 = vld [vmem:[%s3684_s0] ss:$0 sm:$0xff] }
 0x4ea   :  { %v747_v39 = vpop.permute.xlu0 %746  ;;  %893 = vst.msk [vmem:[#allocation2 + $0x8] sm:$0xff] %vm891_vm8, %v888_v40 }
 0x4eb   :  { %753 = vst.msk [vmem:[#allocation2] sm:$0xff] %vm752_vm7, %v747_v39 }
 0x4ec   :  { %892 = vst.msk [vmem:[#allocation2] sm:$0xff] %vm891_vm8, %v886_v37 }
 0x4f2   :  { %v1025_v59 = vpop.permute.xlu0 %1024 }
 0x4f3   :  { %1031 = vst.msk [vmem:[#allocation2] sm:$0xff] %vm1030_vm11, %v1025_v59 }
 0x4fa   :  { %v1027_v62 = vpop.permute.xlu0 %1026  ;;  %v1033_v17 = vld [vmem:[#allocation2] sm:$0xff] }
 0x4fb   :  { %1032 = vst.msk [vmem:[#allocation2 + $0x8] sm:$0xff] %vm1030_vm11, %v1027_v62  ;;  %v1035_v41 = vadd.f32 %v1033_v17, %v486_v19 }
 0x4fd   :  { %v1040_v42 = vsel %vm1039_vm12, %v1035_v41, 0.0 }
 0x4fe   :  { %1041 = vadd.xlane.f32.xlu1 %v1040_v42 }
 0x502   :  { %v1034_v43 = vld [vmem:[#allocation2 + $0x8] sm:$0xff] }
 0x503   :  { %v1036_v46 = vadd.f32 %v1034_v43, %v489_v8 }
 0x505   :  { %v1043_v13 = vsel %vm1039_vm12, %v1036_v46, 0.0 }
 0x506   :  { %1044 = vadd.xlane.f32.xlu2 %v1043_v13 }
 0x571   :  { %v1042_v54 = vpop.xlane.xlu1 %1041 }
 0x572   :  { %v1053_v50 = vmul.f32 %v3267_v53, %v1042_v54 }
 0x574   :  { %v3270_v55 = vsub.f32 %v1035_v41, %v1053_v50 }
 0x576   :  { %v1057_v56 = vmul.f32 %v3270_v55, %v3270_v55 }
 0x578   :  { %v1059_v57 = vsel %vm1039_vm12, %v1057_v56, 0.0 }
 0x579   :  { %1060 = vadd.xlane.f32.xlu0 %v1059_v57  ;;  %v1045_v58 = vpop.xlane.xlu2 %1044 }
 0x57a   :  { %v1054_v60 = vmul.f32 %v3267_v53, %v1045_v58 }
 0x57c   :  { %v3276_v61 = vsub.f32 %v1036_v46, %v1054_v60 }
 0x57e   :  { %v1058_v63 = vmul.f32 %v3276_v61, %v3276_v61 }
 0x580   :  { %v1062_v0 = vsel %vm1039_vm12, %v1058_v63, 0.0 }
 0x581   :  { %1063 = vadd.xlane.f32.xlu1 %v1062_v0 }
 0x5ec   :  { %v1061_v6 = vpop.xlane.xlu0 %1060 }
 0x5ed   :  { %v1065_v9 = vmul.f32 %v1061_v6, %v3267_v53 }
 0x5ef   :  { %v1067_v22 = vadd.f32 1e-05, %v1065_v9 }
 0x5f1   :  { %2399 = vrsqrt.f32 %v1067_v22  ;;  %vm1075_vm15 = vweird.f32 %v1067_v22 }
 0x5f4   :  { %v1064_v28 = vpop.xlane.xlu1 %1063 }
 0x5f5   :  { %v1066_v32 = vmul.f32 %v1064_v28, %v3267_v53 }
 0x5f7   :  { %v2400_v29 = vpop.eup %2399  ;;  %v1068_v30 = vadd.f32 1e-05, %v1066_v32 }
 0x5f8   :  { %v1070_v1 = vmul.f32 %v2400_v29, %v1067_v22  ;;  %vm1076_vm14 = vweird.f32 %v2400_v29 }
 0x5f9   :  { %2401 = vrsqrt.f32 %v1068_v30  ;;  %vm1077_vm0 = vmor %vm1075_vm15, %vm1076_vm14  ;;  %vm1085_vm2 = vweird.f32 %v1068_v30 }
 0x5fa   :  { %v1071_v19 = vmul.f32 %v2400_v29, %v1070_v1 }
 0x5fc   :  { %v1072_v31 = vmul.f32 0.5, %v1071_v19 }
 0x5fe   :  { %v1073_v8 = vsub.f32 1.5, %v1072_v31 }
 0x5ff   :  { %v2402_v33 = vpop.eup %2401 }
 0x600   :  { %v1074_v15 = vmul.f32 %v2400_v29, %v1073_v8  ;;  %v1080_v34 = vmul.f32 %v2402_v33, %v1068_v30  ;;  %vm1086_vm1 = vweird.f32 %v2402_v33 }
 0x601   :  { %vm1087_vm3 = vmor %vm1085_vm2, %vm1086_vm1 }
 0x602   :  { %v1078_v27 = vsel %vm1077_vm0, %v2400_v29, %v1074_v15  ;;  %v1081_v36 = vmul.f32 %v2402_v33, %v1080_v34 }
 0x603   :  { %v1089_v37 = vmul.f32 %v1078_v27, %v3270_v55  ;;  %v3373_v27 = vld [vmem:[#allocation5] sm:$0xff] }
 0x604   :  { %v1082_v39 = vmul.f32 0.5, %v1081_v36 }
 0x605   :  { %v1094_v40 = vmul.f32 %v2351_v35, %v1089_v37 }
 0x606   :  { %v1083_v59 = vsub.f32 1.5, %v1082_v39 }
 0x607   :  { %v1099_v62 = vadd.f32 %v2352_v38, %v1094_v40 }
 0x608   :  { %v1084_v17 = vmul.f32 %v2402_v33, %v1083_v59 }
 0x609   :  { %v3302_v41 = vmax.f32 %v1099_v62, 0.0 }
 0x60a   :  { %v1088_v42 = vsel %vm1087_vm3, %v2402_v33, %v1084_v17 }
 0x60b   :  { %v1090_v43 = vmul.f32 %v1088_v42, %v3276_v61  ;;  %2246 = vmatmul.msk.f32.vlgmr.msrb.gmra.mxu0 %vm1039_vm12, %v3302_v41  ;;  %2248 = vmatmul.msk.f32.vlgmr.msrb.gmra.mxu1 %vm1039_vm12, %v3302_v41 }
 0x60c   :  { %2250 = vmatmul.msk.f32.vlgmr.msrb.gmra.mxu2 %vm1039_vm12, %v3302_v41  ;;  %2252 = vmatmul.msk.f32.vlgmr.msrb.gmra.mxu3 %vm1039_vm12, %v3302_v41 }
 0x60d   :  { %v1095_v46 = vmul.f32 %v2351_v35, %v1090_v43 }
 0x60f   :  { %v1100_v13 = vadd.f32 %v2352_v38, %v1095_v46 }
 0x611   :  { %v3313_v44 = vmax.f32 %v1100_v13, 0.0 }
 0x613   :  { %2247 = vmatmul.msk.f32.gmra.mxu0 %vm1039_vm12, %v3313_v44  ;;  %2249 = vmatmul.msk.f32.gmra.mxu1 %vm1039_vm12, %v3313_v44 }
 0x614   :  { %2251 = vmatmul.msk.f32.gmra.mxu2 %vm1039_vm12, %v3313_v44  ;;  %2253 = vmatmul.msk.f32.gmra.mxu3 %vm1039_vm12, %v3313_v44 }
 0x688   :  { %v1130_v47 = vpop.f32.mrf.mxu0  ;;  %v1157_v45 = vpop.f32.mrf.mxu1 }
 0x689   :  { %1341 = vrot.lane.b32.xlu0 %v1157_v45, %s2822_s11  ;;  %1337 = vrot.lane.b32.xlu1 %v1130_v47, %s2822_s11 }
 0x68f   :  { %v3325_v48 = vpop.f32.mrf.mxu2 }
 0x690   :  { %v1133_v49 = vpop.f32.mrf.mxu0  ;;  %v1160_v51 = vpop.f32.mrf.mxu1 }
 0x691   :  { %1343 = vrot.lane.b32.xlu2 %v1160_v51, %s2822_s11  ;;  %2254 = vmatpush.xpose.msk.msra.mxu0 %vm492_vm9, %v1160_v51 }
 0x692   :  { %1619 = vrot.lane.b32.xlu1 %v1157_v45, %s2824_s27  ;;  %1339 = vrot.lane.b32.xlu0 %v1133_v49, %s2822_s11 }
 0x695   :  { %2255 = vmatpush.xpose.msk.msra.mxu0 %vm492_vm9, %v1157_v45 }
 0x697   :  { %v3332_v54 = vpop.f32.mrf.mxu2 }
 0x698   :  { %1326 = vmatpush.msra.mxu1 %v3332_v54  ;;  %2256 = vmatmul.msk.f32.vlgmr.msra.gmra.mxu0 %vm492_vm9, %v1130_v47 }
 0x699   :  { %1621 = vrot.lane.b32.xlu2 %v1160_v51, %s2824_s27 }
 0x69a   :  { %1327 = vmatpush.msra.mxu1 %v3325_v48  ;;  %1481 = vrot.lane.b32.xlu1 %v1157_v45, %s2823_s10 }
 0x69b   :  { %1615 = vrot.lane.b32.xlu0 %v1130_v47, %s2824_s27 }
 0x6a0   :  { %2257 = vmatmul.msk.f32.gmra.mxu0 %vm492_vm9, %v1133_v49 }
 0x6a1   :  { %1483 = vrot.lane.b32.xlu2 %v1160_v51, %s2823_s10 }
 0x6a2   :  { %1479 = vrot.lane.b32.xlu1 %v1133_v49, %s2823_s10 }
 0x6a3   :  { %1617 = vrot.lane.b32.xlu0 %v1133_v49, %s2824_s27 }
 0x6a9   :  { %1477 = vrot.lane.b32.xlu2 %v1130_v47, %s2823_s10 }
 0x6eb   :  { %v1344_v50 = vpop.permute.xlu2 %1343 }
 0x6ec   :  { %2260 = vmatpush.xpose.msk.msra.mxu2 %vm492_vm9, %v1344_v50 }
 0x6f3   :  { %v1622_v55 = vpop.permute.xlu2 %1621 }
 0x6fb   :  { %v1342_v56 = vpop.permute.xlu0 %1341  ;;  %v1484_v57 = vpop.permute.xlu2 %1483 }
 0x6fc   :  { %v1338_v58 = vpop.permute.xlu1 %1337  ;;  %2261 = vmatpush.xpose.msk.msra.mxu2 %vm492_vm9, %v1342_v56  ;;  %2266 = vmatpush.xpose.msk.msrb.mxu0 %vm492_vm9, %v1484_v57  ;;  %v3380_v56 = vld [vmem:[#allocation5 + $0x8] sm:$0xff] }
 0x6ff   :  { %2262 = vmatmul.msk.f32.vlgmr.msra.gmra.mxu2 %vm492_vm9, %v1338_v58 }
 0x700   :  { %2272 = vmatpush.xpose.msk.msrb.mxu2 %vm492_vm9, %v1622_v55 }
 0x703   :  { %v1478_v2 = vpop.permute.xlu2 %1477 }
 0x704   :  { %v1620_v60 = vpop.permute.xlu1 %1619  ;;  %v1340_v61 = vpop.permute.xlu0 %1339 }
 0x705   :  { %2273 = vmatpush.xpose.msk.msrb.mxu2 %vm492_vm9, %v1620_v60 }
 0x707   :  { %2263 = vmatmul.msk.f32.gmra.mxu2 %vm492_vm9, %v1340_v61 }
 0x70c   :  { %v1482_v63 = vpop.permute.xlu1 %1481 }
 0x70d   :  { %v1616_v0 = vpop.permute.xlu0 %1615  ;;  %2267 = vmatpush.xpose.msk.msrb.mxu0 %vm492_vm9, %v1482_v63 }
 0x70f   :  { %2274 = vmatmul.msk.f32.vlgmr.msrb.gmra.mxu2 %vm492_vm9, %v1616_v0 }
 0x710   :  { %2268 = vmatmul.msk.f32.vlgmr.msrb.gmra.mxu0 %vm492_vm9, %v1478_v2 }
 0x714   :  { %v1480_v6 = vpop.permute.xlu1 %1479 }
 0x715   :  { %v1246_v4 = vpop.f32.mrf.mxu0  ;;  %v1618_v5 = vpop.permute.xlu0 %1617 }
 0x716   :  { %v1247_v24 = vadd.f32 %v1246_v4, %v3100_v11 }
 0x717   :  { %2275 = vmatmul.msk.f32.gmra.mxu2 %vm492_vm9, %v1618_v5 }
 0x718   :  { %2269 = vmatmul.msk.f32.gmra.mxu0 %vm492_vm9, %v1480_v6  ;;  %v1252_v3 = vsel %vm528_vm10, %v1247_v24, -inf }
 0x719   :  { %1253 = vmax.xlane.f32.xlu2 %v1252_v3 }
 0x71d   :  { %v1249_v9 = vpop.f32.mrf.mxu0 }
 0x71e   :  { %v1250_v14 = vadd.f32 %v1249_v9, %v3110_v21 }
 0x720   :  { %v1255_v23 = vsel %vm528_vm10, %v1250_v14, -inf }
 0x782   :  { %v1370_v7 = vpop.f32.mrf.mxu2 }
 0x783   :  { %v1371_v52 = vadd.f32 %v1370_v7, %v3100_v11 }
 0x785   :  { %v1376_v12 = vsel %vm528_vm10, %v1371_v52, -inf }
 0x786   :  { %1377 = vmax.xlane.f32.xlu0 %v1376_v12 }
 0x78a   :  { %v1373_v16 = vpop.f32.mrf.mxu2 }
 0x78b   :  { %v1374_v18 = vadd.f32 %v1373_v16, %v3110_v21 }
 0x78c   :  { %v1254_v10 = vpop.xlane.xlu2 %1253 }
 0x78d   :  { %v1510_v20 = vpop.f32.mrf.mxu0  ;;  %v1379_v22 = vsel %vm528_vm10, %v1374_v18, -inf  ;;  %v1258_v25 = vsub.f32 %v1247_v24, %v1254_v10 }
 0x78e   :  { %1380 = vmax.xlane.f32.xlu1 %v1379_v22  ;;  %1256 = vmax.xlane.f32.xlu0 %v1255_v23  ;;  %v1511_v26 = vadd.f32 %v1510_v20, %v3100_v11 }
 0x78f   :  { %v1260_v29 = vmul.f32 1.442695, %v1258_v25 }
 0x790   :  { %v1516_v30 = vsel %vm528_vm10, %v1511_v26, -inf }
 0x791   :  { %2403 = vpow2.f32 %v1260_v29 }
 0x792   :  { %v1648_v28 = vpop.f32.mrf.mxu2 }
 0x793   :  { %v1649_v32 = vadd.f32 %v1648_v28, %v3100_v11 }
 0x795   :  { %v1654_v1 = vsel %vm528_vm10, %v1649_v32, -inf  ;;  %v1513_v19 = vpop.f32.mrf.mxu0 }
 0x796   :  { %1517 = vmax.xlane.f32.xlu1 %v1516_v30  ;;  %1655 = vmax.xlane.f32.xlu2 %v1654_v1  ;;  %v1514_v31 = vadd.f32 %v1513_v19, %v3110_v21 }
 0x797   :  { %v2404_v35 = vpop.eup %2403 }
 0x798   :  { %v1519_v34 = vsel %vm528_vm10, %v1514_v31, -inf  ;;  %v3376_v36 = vmul.f32 %v3373_v27, %v2404_v35 }
 0x79a   :  { %v1651_v8 = vpop.f32.mrf.mxu2  ;;  %v1266_v37 = vsel %vm528_vm10, %v3376_v36, 0.0 }
 0x79b   :  { %v1652_v33 = vadd.f32 %v1651_v8, %v3110_v21 }
 0x79d   :  { %v1657_v15 = vsel %vm528_vm10, %v1652_v33, -inf }
 0x79e   :  { %1658 = vmax.xlane.f32.xlu0 %v1657_v15  ;;  %1520 = vmax.xlane.f32.xlu2 %v1519_v34 }
 0x7a6   :  { %1267 = vadd.xlane.f32.xlu0 %v1266_v37 }
 0x7f9   :  { %v1378_v38 = vpop.xlane.xlu0 %1377 }
 0x7fa   :  { %v1382_v17 = vsub.f32 %v1371_v52, %v1378_v38 }
 0x7fc   :  { %v1384_v46 = vmul.f32 1.442695, %v1382_v17 }
 0x801   :  { %v1381_v39 = vpop.xlane.xlu1 %1380  ;;  %v1257_v40 = vpop.xlane.xlu0 %1256 }
 0x802   :  { %v1383_v59 = vsub.f32 %v1374_v18, %v1381_v39  ;;  %v1259_v62 = vsub.f32 %v1250_v14, %v1257_v40 }
 0x804   :  { %v1386_v42 = vmul.f32 1.442695, %v1383_v59  ;;  %v1262_v43 = vmul.f32 1.442695, %v1259_v62 }
 0x806   :  { %2405 = vpow2.f32 %v1386_v42 }
 0x807   :  { %2407 = vpow2.f32 %v1262_v43 }
 0x808   :  { %2409 = vpow2.f32 %v1384_v46 }
 0x809   :  { %v1518_v13 = vpop.xlane.xlu1 %1517  ;;  %v1656_v47 = vpop.xlane.xlu2 %1655 }
 0x80a   :  { %v1660_v45 = vsub.f32 %v1649_v32, %v1656_v47  ;;  %v1522_v49 = vsub.f32 %v1511_v26, %v1518_v13 }
 0x80c   :  { %v2406_v51 = vpop.eup %2405  ;;  %v1662_v50 = vmul.f32 1.442695, %v1660_v45  ;;  %v1524_v60 = vmul.f32 1.442695, %v1522_v49 }
 0x80d   :  { %v2408_v55 = vpop.eup %2407  ;;  %v3383_v57 = vmul.f32 %v3380_v56, %v2406_v51 }
 0x80e   :  { %v3386_v58 = vmul.f32 %v3380_v56, %v2408_v55  ;;  %2411 = vpow2.f32 %v1662_v50  ;;  %v2410_v0 = vpop.eup %2409 }
 0x80f   :  { %v1393_v61 = vsel %vm528_vm10, %v3383_v57, 0.0  ;;  %2413 = vpow2.f32 %v1524_v60  ;;  %v3393_v3 = vmul.f32 %v3373_v27, %v2410_v0 }
 0x810   :  { %v1269_v63 = vsel %vm528_vm10, %v3386_v58, 0.0  ;;  %1394 = vadd.xlane.f32.xlu2 %v1393_v61 }
 0x811   :  { %1270 = vadd.xlane.f32.xlu1 %v1269_v63  ;;  %v1659_v2 = vpop.xlane.xlu0 %1658  ;;  %v1521_v4 = vpop.xlane.xlu2 %1520  ;;  %v1390_v12 = vsel %vm528_vm10, %v3393_v3, 0.0 }
 0x812   :  { %v1661_v5 = vsub.f32 %v1652_v33, %v1659_v2  ;;  %v1523_v24 = vsub.f32 %v1514_v31, %v1521_v4  ;;  %v2334_v31 = vpack.i.bf16 %v3325_v48, %v3332_v54 }
 0x814   :  { %v1664_v6 = vmul.f32 1.442695, %v1661_v5  ;;  %v2412_v7 = vpop.eup %2411  ;;  %v1526_v9 = vmul.f32 1.442695, %v1523_v24 }
 0x815   :  { %v3396_v52 = vmul.f32 %v3373_v27, %v2412_v7  ;;  %v2414_v16 = vpop.eup %2413 }
 0x816   :  { %2415 = vpow2.f32 %v1664_v6  ;;  %v3403_v22 = vmul.f32 %v3373_v27, %v2414_v16 }
 0x817   :  { %v1668_v14 = vsel %vm528_vm10, %v3396_v52, 0.0  ;;  %2417 = vpow2.f32 %v1526_v9 }
 0x818   :  { %1669 = vadd.xlane.f32.xlu0 %v1668_v14  ;;  %v1530_v26 = vsel %vm528_vm10, %v3403_v22, 0.0 }
 0x819   :  { %1391 = vadd.xlane.f32.xlu1 %v1390_v12  ;;  %v1268_v18 = vpop.xlane.xlu0 %1267 }
 0x81a   :  { %vm1272_vm4 = vcmp.gt.f32.partialorder %v1268_v18, 0.0 }
 0x81b   :  { %v1274_v20 = vsel %vm1272_vm4, %v1268_v18, 1.0 }
 0x81c   :  { %v2416_v10 = vpop.eup %2415  ;;  %2419 = vrcp.f32 %v1274_v20  ;;  %v1287_v19 = vand.u32 2147483648, %v1274_v20  ;;  %v1285_v33 = vand.u32 2147483647, %v1274_v20  ;;  %vm1281_vm6 = vweird.f32 %v1274_v20 }
 0x81d   :  { %v3406_v23 = vmul.f32 %v3380_v56, %v2416_v10  ;;  %v2418_v28 = vpop.eup %2417 }
 0x81e   :  { %v3413_v30 = vmul.f32 %v3380_v56, %v2418_v28  ;;  %v1288_v35 = vor.u32 1.1754944e-38, %v1287_v19  ;;  %vm1286_vm14 = vcmp.eq.f32.partialorder %v1285_v33, 8.507059e+37 }
 0x81f   :  { %v1671_v25 = vsel %vm528_vm10, %v3406_v23, 0.0 }
 0x820   :  { %1672 = vadd.xlane.f32.xlu0 %v1671_v25  ;;  %v1533_v15 = vsel %vm528_vm10, %v3413_v30, 0.0 }
 0x821   :  { %1531 = vadd.xlane.f32.xlu1 %v1530_v26 }
 0x822   :  { %v2420_v32 = vpop.eup %2419 }
 0x823   :  { %v1277_v29 = vmul.f32 %v2420_v32, %v1274_v20  ;;  %vm1282_vm5 = vweird.f32 %v2420_v32 }
 0x824   :  { %vm1283_vm13 = vmor %vm1281_vm6, %vm1282_vm5 }
 0x825   :  { %v1278_v1 = vsub.f32 1.0, %v1277_v29 }
 0x827   :  { %v1279_v8 = vmul.f32 %v2420_v32, %v1278_v1 }
 0x828   :  { %2335 = vrot.lane.b32.xlu2 %v2334_v31, %s2822_s11 }
 0x829   :  { %v1280_v34 = vadd.f32 %v2420_v32, %v1279_v8  ;;  %1534 = vadd.xlane.f32.xlu1 %v1533_v15 }
 0x82b   :  { %v1284_v37 = vsel %vm1283_vm13, %v2420_v32, %v1280_v34 }
 0x82c   :  { %v1289_v38 = vsel %vm1286_vm14, %v1288_v35, %v1284_v37 }
 0x82d   :  { %v1290_v39 = vmul.f32 %v1289_v38, %v3376_v36 }
 0x82f   :  { %2258 = vmatmul.msk.f32.vlgmr.msra.gmra.mxu1 %vm528_vm10, %v1290_v39 }
 0x834   :  { %2340 = vrot.lane.b32.xlu0 %v2334_v31, %s2824_s27 }
 0x842   :  { %2345 = vrot.lane.b32.xlu1 %v2334_v31, %s2823_s10 }
 0x883   :  { %v1395_v48 = vpop.xlane.xlu2 %1394 }
 0x884   :  { %v1271_v54 = vpop.xlane.xlu1 %1270  ;;  %vm1397_vm15 = vcmp.gt.f32.partialorder %v1395_v48, 0.0 }
 0x885   :  { %vm1273_vm0 = vcmp.gt.f32.partialorder %v1271_v54, 0.0  ;;  %v3424_v40 = vsel %vm1397_vm15, %v1395_v48, 1.0 }
 0x886   :  { %v1275_v59 = vsel %vm1273_vm0, %v1271_v54, 1.0  ;;  %v1426_v35 = vand.u32 2147483648, %v3424_v40  ;;  %v1424_v39 = vand.u32 2147483647, %v3424_v40 }
 0x887   :  { %2421 = vrcp.f32 %v1275_v59  ;;  %v1302_v60 = vand.u32 2147483648, %v1275_v59  ;;  %v1300_v0 = vand.u32 2147483647, %v1275_v59  ;;  %vm1296_vm6 = vweird.f32 %v1275_v59 }
 0x888   :  { %2423 = vrcp.f32 %v3424_v40 }
 0x889   :  { %v1303_v12 = vor.u32 1.1754944e-38, %v1302_v60  ;;  %vm1301_vm14 = vcmp.eq.f32.partialorder %v1300_v0, 8.507059e+37 }
 0x88b   :  { %v2336_v62 = vpop.permute.xlu2 %2335  ;;  %v1670_v42 = vpop.xlane.xlu0 %1669 }
 0x88c   :  { %v1392_v17 = vpop.xlane.xlu1 %1391  ;;  %v2337_v36 = vunpack.i.l.bf16 %v2336_v62  ;;  %vm1674_vm2 = vcmp.gt.f32.partialorder %v1670_v42, 0.0  ;;  %v2338_v49 = vunpack.i.h.bf16 %v2336_v62 }
 0x88d   :  { %v2422_v43 = vpop.eup %2421  ;;  %vm1396_vm1 = vcmp.gt.f32.partialorder %v1392_v17, 0.0  ;;  %v3429_v45 = vsel %vm1674_vm2, %v1670_v42, 1.0 }
 0x88e   :  { %v3427_v46 = vpop.eup %2423  ;;  %v1292_v13 = vmul.f32 %v2422_v43, %v1275_v59  ;;  %v1398_v47 = vsel %vm1396_vm1, %v1392_v17, 1.0  ;;  %1458 = vmatpush.msra.mxu3 %v2337_v36  ;;  %vm1297_vm3 = vweird.f32 %v2422_v43 }
 0x88f   :  { %2425 = vrcp.f32 %v1398_v47  ;;  %v1416_v50 = vmul.f32 %v3427_v46, %v3424_v40  ;;  %vm1298_vm13 = vmor %vm1296_vm6, %vm1297_vm3  ;;  %v1409_v16 = vand.u32 2147483647, %v1398_v47  ;;  %v1411_v20 = vand.u32 2147483648, %v1398_v47 }
 0x890   :  { %v1293_v51 = vsub.f32 1.0, %v1292_v13  ;;  %1459 = vmatpush.msra.mxu3 %v2338_v49  ;;  %2427 = vrcp.f32 %v3429_v45  ;;  %vm1405_vm0 = vweird.f32 %v1398_v47  ;;  %vm1421_vm1 = vweird.f32 %v3427_v46 }
 0x891   :  { %v1417_v4 = vsub.f32 1.0, %v1416_v50  ;;  %vm1410_vm3 = vcmp.eq.f32.partialorder %v1409_v16, 8.507059e+37  ;;  %v1412_v19 = vor.u32 1.1754944e-38, %v1411_v20  ;;  %v1689_v13 = vand.u32 2147483648, %v3429_v45 }
 0x892   :  { %v1294_v55 = vmul.f32 %v2422_v43, %v1293_v51  ;;  %v1687_v49 = vand.u32 2147483647, %v3429_v45 }
 0x893   :  { %v1673_v63 = vpop.xlane.xlu0 %1672  ;;  %v1418_v18 = vmul.f32 %v3427_v46, %v1417_v4 }
 0x894   :  { %v1532_v61 = vpop.xlane.xlu1 %1531  ;;  %vm1675_vm5 = vcmp.gt.f32.partialorder %v1673_v63, 0.0  ;;  %v1295_v5 = vadd.f32 %v2422_v43, %v1294_v55 }
 0x895   :  { %v2426_v2 = vpop.eup %2425  ;;  %vm1536_vm4 = vcmp.gt.f32.partialorder %v1532_v61, 0.0  ;;  %v3436_v7 = vsel %vm1675_vm5, %v1673_v63, 1.0  ;;  %v1419_v34 = vadd.f32 %v3427_v46, %v1418_v18  ;;  %vm1420_vm5 = vweird.f32 %v3424_v40 }
 0x896   :  { %v1401_v24 = vmul.f32 %v2426_v2, %v1398_v47  ;;  %v3434_v6 = vsel %vm1536_vm4, %v1532_v61, 1.0  ;;  %v3438_v9 = vpop.eup %2427  ;;  %v1299_v10 = vsel %vm1298_vm13, %v2422_v43, %v1295_v5  ;;  %vm1406_vm15 = vweird.f32 %v2426_v2  ;;  %vm1422_vm6 = vmor %vm1420_vm5, %vm1421_vm1 }
 0x897   :  { %2429 = vrcp.f32 %v3434_v6  ;;  %v1679_v26 = vmul.f32 %v3438_v9, %v3429_v45  ;;  %v1304_v28 = vsel %vm1301_vm14, %v1303_v12, %v1299_v10  ;;  %vm1407_vm2 = vmor %vm1405_vm0, %vm1406_vm15  ;;  %v1423_v62 = vsel %vm1422_vm6, %v3427_v46, %v1419_v34 }
 0x898   :  { %v1402_v14 = vsub.f32 1.0, %v1401_v24  ;;  %2431 = vrcp.f32 %v3436_v7  ;;  %v1305_v32 = vmul.f32 %v1304_v28, %v3386_v58  ;;  %vm1425_vm13 = vcmp.eq.f32.partialorder %v1424_v39, 8.507059e+37 }
 0x899   :  { %v1680_v33 = vsub.f32 1.0, %v1679_v26  ;;  %vm1684_vm14 = vweird.f32 %v3438_v9  ;;  %vm1683_vm15 = vweird.f32 %v3429_v45  ;;  %v1690_v63 = vor.u32 1.1754944e-38, %v1689_v13 }
 0x89a   :  { %v1403_v25 = vmul.f32 %v2426_v2, %v1402_v14  ;;  %2259 = vmatmul.msk.f32.gmra.mxu1 %vm528_vm10, %v1305_v32  ;;  %vm1685_vm0 = vmor %vm1683_vm15, %vm1684_vm14  ;;  %vm1688_vm1 = vcmp.eq.f32.partialorder %v1687_v49, 8.507059e+37  ;;  %v1551_v24 = vand.u32 2147483648, %v3434_v6  ;;  %v1549_v14 = vand.u32 2147483647, %v3434_v6 }
 0x89b   :  { %v1681_v48 = vmul.f32 %v3438_v9, %v1680_v33  ;;  %vm1698_vm6 = vweird.f32 %v3436_v7  ;;  %v1702_v16 = vand.u32 2147483647, %v3436_v7 }
 0x89c   :  { %v1404_v29 = vadd.f32 %v2426_v2, %v1403_v25  ;;  %v1535_v1 = vpop.xlane.xlu1 %1534  ;;  %v1552_v25 = vor.u32 1.1754944e-38, %v1551_v24  ;;  %vm1550_vm14 = vcmp.eq.f32.partialorder %v1549_v14, 8.507059e+37  ;;  %v1822_v24 = vld [vmem:[#allocation17 + $0x18] sm:$0xff] }
 0x89d   :  { %vm1537_vm4 = vcmp.gt.f32.partialorder %v1535_v1, 0.0  ;;  %v3449_v31 = vpop.eup %2429  ;;  %v1682_v17 = vadd.f32 %v3438_v9, %v1681_v48  ;;  %vm1703_vm15 = vcmp.eq.f32.partialorder %v1702_v16, 8.507059e+37  ;;  %1841 = vmatpush.msra.mxu0 %v1822_v24  ;;  %v1909_v16 = vld [vmem:[#allocation22 + $0x18] sm:$0xff] }
 0x89e   :  { %v1408_v8 = vsel %vm1407_vm2, %v2426_v2, %v1404_v29  ;;  %v3451_v15 = vsel %vm1537_vm4, %v1535_v1, 1.0  ;;  %v3454_v58 = vpop.eup %2431  ;;  %v1541_v54 = vmul.f32 %v3449_v31, %v3434_v6  ;;  %vm1546_vm2 = vweird.f32 %v3449_v31 }
 0x89f   :  { %v1413_v37 = vsel %vm1410_vm3, %v1412_v19, %v1408_v8  ;;  %2433 = vrcp.f32 %v3451_v15  ;;  %v1694_v59 = vmul.f32 %v3454_v58, %v3436_v7  ;;  %v1686_v50 = vsel %vm1685_vm0, %v3438_v9, %v1682_v17 }
 0x8a0   :  { %v1414_v38 = vmul.f32 %v1413_v37, %v3393_v3  ;;  %v1427_v3 = vor.u32 1.1754944e-38, %v1426_v35  ;;  %v1542_v42 = vsub.f32 1.0, %v1541_v54  ;;  %v1691_v2 = vsel %vm1688_vm1, %v1690_v63, %v1686_v50 }
 0x8a1   :  { %v1695_v36 = vsub.f32 1.0, %v1694_v59  ;;  %vm1699_vm3 = vweird.f32 %v3454_v58  ;;  %vm1545_vm4 = vweird.f32 %v3434_v6  ;;  %v1704_v9 = vand.u32 2147483648, %v3436_v7 }
 0x8a2   :  { %2264 = vmatmul.msk.f32.vlgmr.msra.gmra.mxu3 %vm528_vm10, %v1414_v38  ;;  %v1428_v40 = vsel %vm1425_vm13, %v1427_v3, %v1423_v62  ;;  %v1543_v55 = vmul.f32 %v3449_v31, %v1542_v42  ;;  %v1692_v12 = vmul.f32 %v1691_v2, %v3396_v52  ;;  %vm1547_vm5 = vmor %vm1545_vm4, %vm1546_vm2  ;;  %v1566_v29 = vand.u32 2147483648, %v3451_v15 }
 0x8a3   :  { %v1429_v46 = vmul.f32 %v1428_v40, %v3383_v57  ;;  %v1696_v60 = vmul.f32 %v3454_v58, %v1695_v36  ;;  %vm1700_vm13 = vmor %vm1698_vm6, %vm1699_vm3  ;;  %v1705_v26 = vor.u32 1.1754944e-38, %v1704_v9  ;;  %vm1560_vm1 = vweird.f32 %v3451_v15  ;;  %v1855_v9 = vld [vmem:[#allocation19 + $0x18] sm:$0xff] }
 0x8a4   :  { %v1544_v57 = vadd.f32 %v3449_v31, %v1543_v55  ;;  %v1564_v8 = vand.u32 2147483647, %v3451_v15  ;;  %v1567_v34 = vor.u32 1.1754944e-38, %v1566_v29  ;;  %v1879_v29 = vld [vmem:[#allocation20] sm:$0xff] }
 0x8a5   :  { %v3472_v43 = vpop.eup %2433  ;;  %v1697_v5 = vadd.f32 %v3454_v58, %v1696_v60 }
 0x8a6   :  { %v2341_v47 = vpop.permute.xlu0 %2340  ;;  %v1556_v61 = vmul.f32 %v3472_v43, %v3451_v15  ;;  %v1548_v18 = vsel %vm1547_vm5, %v3449_v31, %v1544_v57  ;;  %vm1561_vm0 = vweird.f32 %v3472_v43  ;;  %vm1565_vm3 = vcmp.eq.f32.partialorder %v1564_v8, 8.507059e+37 }
 0x8a7   :  { %v2342_v51 = vunpack.i.l.bf16 %v2341_v47  ;;  %v2343_v0 = vunpack.i.h.bf16 %v2341_v47  ;;  %v1701_v10 = vsel %vm1700_vm13, %v3454_v58, %v1697_v5  ;;  %v1553_v28 = vsel %vm1550_vm14, %v1552_v25, %v1548_v18  ;;  %vm1562_vm2 = vmor %vm1560_vm1, %vm1561_vm0  ;;  %v1821_v18 = vld [vmem:[#allocation17 + $0x10] sm:$0xff] }
 0x8a8   :  { %v1557_v4 = vsub.f32 1.0, %v1556_v61  ;;  %v1706_v32 = vsel %vm1703_vm15, %v1705_v26, %v1701_v10  ;;  %v1554_v19 = vmul.f32 %v1553_v28, %v3403_v22  ;;  %v1211_v22 = vpop.f32.mrf.mxu3  ;;  %v1881_v10 = vld [vmem:[#allocation20 + $0x10] sm:$0xff]  ;;  %1842 = vmatpush.msra.mxu0 %v1821_v18  ;;  %v1820_v26 = vld [vmem:[#allocation17 + $0x8] sm:$0xff] }
 0x8a9   :  { %1734 = vmatpush.msrb.mxu3 %v2342_v51  ;;  %v1707_v31 = vmul.f32 %v1706_v32, %v3406_v23  ;;  %v1908_v25 = vld [vmem:[#allocation22 + $0x10] sm:$0xff]  ;;  %v1880_v28 = vld [vmem:[#allocation20 + $0x8] sm:$0xff]  ;;  %v1819_v32 = vld [vmem:[#allocation17] sm:$0xff] }
 0x8aa   :  { %2265 = vmatmul.msk.f32.gmra.mxu3 %vm528_vm10, %v1429_v46  ;;  %v1558_v20 = vmul.f32 %v3472_v43, %v1557_v4  ;;  %1843 = vmatpush.msra.mxu0 %v1820_v26 }
 0x8ab   :  { %1735 = vmatpush.msrb.mxu3 %v2343_v0 }
 0x8ac   :  { %v1329_v45 = vpop.f32.mrf.mxu1  ;;  %v1559_v7 = vadd.f32 %v3472_v43, %v1558_v20  ;;  %v1854_v20 = vld [vmem:[#allocation19 + $0x10] sm:$0xff]  ;;  %1844 = vmatpush.msra.mxu0 %v1819_v32 }
 0x8ad   :  { %1335 = vst.msk [vmem:[#allocation2] sm:$0xff] %vm492_vm9, %v1329_v45  ;;  %1922 = vmatpush.msra.mxu3 %v1909_v16 }
 0x8ae   :  { %v1563_v33 = vsel %vm1562_vm2, %v3472_v43, %v1559_v7  ;;  %v1852_v7 = vld [vmem:[#allocation19] sm:$0xff] }
 0x8af   :  { %v1568_v58 = vsel %vm1565_vm3, %v1567_v34, %v1563_v33  ;;  %1923 = vmatpush.msra.mxu3 %v1908_v25 }
 0x8b0   :  { %v1569_v35 = vmul.f32 %v1568_v58, %v3413_v30  ;;  %v1214_v23 = vpop.f32.mrf.mxu3 }
 0x8b2   :  { %2276 = vmatmul.msk.f32.vlgmr.msrb.gmra.mxu3 %vm528_vm10, %v1692_v12  ;;  %v1882_v12 = vld [vmem:[#allocation20 + $0x18] sm:$0xff] }
 0x8b3   :  { %1895 = vmatpush.msra.mxu2 %v1882_v12 }
 0x8b4   :  { %v2346_v52 = vpop.permute.xlu1 %2345 }
 0x8b5   :  { %v2347_v6 = vunpack.i.l.bf16 %v2346_v52  ;;  %v2348_v1 = vunpack.i.h.bf16 %v2346_v52  ;;  %1896 = vmatpush.msra.mxu2 %v1881_v10  ;;  %v1853_v52 = vld [vmem:[#allocation19 + $0x8] sm:$0xff] }
 0x8b7   :  { %1596 = vmatpush.msrb.mxu1 %v2347_v6  ;;  %v1907_v6 = vld [vmem:[#allocation22 + $0x8] sm:$0xff]  ;;  %1897 = vmatpush.msra.mxu2 %v1880_v28 }
 0x8b8   :  { %1924 = vmatpush.msra.mxu3 %v1907_v6 }
 0x8b9   :  { %1597 = vmatpush.msrb.mxu1 %v2348_v1  ;;  %v1906_v1 = vld [vmem:[#allocation22] sm:$0xff]  ;;  %1898 = vmatpush.msra.mxu2 %v1879_v29 }
 0x8ba   :  { %2270 = vmatmul.msk.f32.vlgmr.msrb.gmra.mxu1 %vm528_vm10, %v1554_v19  ;;  %2277 = vmatmul.msk.f32.gmra.mxu3 %vm528_vm10, %v1707_v31 }
 0x8bb   :  { %1868 = vmatpush.msra.mxu1 %v1855_v9  ;;  %1925 = vmatpush.msra.mxu3 %v1906_v1 }
 0x8bd   :  { %1869 = vmatpush.msra.mxu1 %v1854_v20 }
 0x8bf   :  { %1870 = vmatpush.msra.mxu1 %v1853_v52 }
 0x8c1   :  { %1871 = vmatpush.msra.mxu1 %v1852_v7 }
 0x8c2   :  { %2271 = vmatmul.msk.f32.gmra.mxu1 %vm528_vm10, %v1569_v35 }
 0x917   :  { %v1332_v37 = vpop.f32.mrf.mxu1 }
 0x918   :  { %1336 = vst.msk [vmem:[#allocation2 + $0x8] sm:$0xff] %vm492_vm9, %v1332_v37 }
 0x925   :  { %v1461_v15 = vpop.f32.mrf.mxu3 }
 0x92d   :  { %v1464_v38 = vpop.f32.mrf.mxu3 }
 0x935   :  { %v1737_v39 = vpop.f32.mrf.mxu3 }
 0x936   :  { %1745 = vrot.lane.b32.xlu0 %v1737_v39, %s2826_s3  ;;  %v2354_v39 = vld [vmem:[%s3646_s15] ss:$0 sm:$0xff] }
 0x937   :  { %v1599_v48 = vpop.f32.mrf.mxu1 }
 0x938   :  { %1607 = vrot.lane.b32.xlu2 %v1599_v48, %s2825_s30 }
 0x93d   :  { %v1740_v54 = vpop.f32.mrf.mxu3 }
 0x93e   :  { %1747 = vrot.lane.b32.xlu1 %v1740_v54, %s2826_s3 }
 0x93f   :  { %v1602_v59 = vpop.f32.mrf.mxu1 }
 0x940   :  { %1469 = vrot.lane.b32.xlu2 %v1461_v15, %s2807_s5  ;;  %1609 = vrot.lane.b32.xlu0 %v1602_v59, %s2825_s30 }
 0x948   :  { %1471 = vrot.lane.b32.xlu2 %v1464_v38, %s2807_s5 }
 0x992   :  { %v1608_v30 = vpop.permute.xlu2 %1607 }
 0x99a   :  { %v1470_v62 = vpop.permute.xlu2 %1469 }
 0x99b   :  { %1475 = vst.msk [vmem:[#allocation2] sm:$0xff] %vm752_vm7, %v1470_v62 }
 0x99c   :  { %1613 = vst.msk [vmem:[#allocation2] sm:$0xff] %vm891_vm8, %v1608_v30 }
 0x9a2   :  { %v1472_v3 = vpop.permute.xlu2 %1471 }
 0x9a3   :  { %1476 = vst.msk [vmem:[#allocation2 + $0x8] sm:$0xff] %vm752_vm7, %v1472_v3 }
 0x9a8   :  { %v1746_v40 = vpop.permute.xlu0 %1745 }
 0x9a9   :  { %1751 = vst.msk [vmem:[#allocation2] sm:$0xff] %vm1030_vm11, %v1746_v40  ;;  %v1813_v40 = vmul.f32 0.1, %v3302_v41 }
 0x9b0   :  { %v1753_v17 = vld [vmem:[#allocation2] sm:$0xff]  ;;  %v1748_v43 = vpop.permute.xlu1 %1747 }
 0x9b1   :  { %v1755_v42 = vadd.f32 %v1753_v17, %v1211_v22 }
 0x9b2   :  { %v1610_v36 = vpop.permute.xlu0 %1609 }
 0x9b3   :  { %1614 = vst.msk [vmem:[#allocation2 + $0x8] sm:$0xff] %vm891_vm8, %v1610_v36  ;;  %v1759_v13 = vsel %vm1039_vm12, %v1755_v42, 0.0 }
 0x9b4   :  { %1752 = vst.msk [vmem:[#allocation2 + $0x8] sm:$0xff] %vm1030_vm11, %v1748_v43  ;;  %1760 = vadd.xlane.f32.xlu2 %v1759_v13 }
 0x9bb   :  { %v1754_v47 = vld [vmem:[#allocation2 + $0x8] sm:$0xff] }
 0x9bc   :  { %v1756_v49 = vadd.f32 %v1754_v47, %v1214_v23  ;;  %v2353_v23 = vld [vmem:[%s3645_s14] ss:$0 sm:$0xff] }
 0x9be   :  { %v1762_v51 = vsel %vm1039_vm12, %v1756_v49, 0.0 }
 0x9bf   :  { %1763 = vadd.xlane.f32.xlu0 %v1762_v51  ;;  %v1814_v51 = vmul.f32 0.1, %v3313_v44 }
 0xa27   :  { %v1761_v46 = vpop.xlane.xlu2 %1760 }
 0xa28   :  { %v1765_v50 = vmul.f32 %v1761_v46, %v3267_v53 }
 0xa2a   :  { %v3528_v55 = vsub.f32 %v1755_v42, %v1765_v50 }
 0xa2c   :  { %v1769_v60 = vmul.f32 %v3528_v55, %v3528_v55 }
 0xa2e   :  { %v1771_v61 = vsel %vm1039_vm12, %v1769_v60, 0.0 }
 0xa2f   :  { %1772 = vadd.xlane.f32.xlu1 %v1771_v61 }
 0xa32   :  { %v1764_v63 = vpop.xlane.xlu0 %1763 }
 0xa33   :  { %v1766_v0 = vmul.f32 %v1764_v63, %v3267_v53 }
 0xa35   :  { %v3534_v45 = vsub.f32 %v1756_v49, %v1766_v0 }
 0xa37   :  { %v1770_v2 = vmul.f32 %v3534_v45, %v3534_v45 }
 0xa39   :  { %v1774_v57 = vsel %vm1039_vm12, %v1770_v2, 0.0 }
 0xa3a   :  { %1775 = vadd.xlane.f32.xlu2 %v1774_v57 }
 0xaa2   :  { %v1773_v4 = vpop.xlane.xlu1 %1772 }
 0xaa3   :  { %v1777_v5 = vmul.f32 %v1773_v4, %v3267_v53 }
 0xaa5   :  { %v1779_v14 = vadd.f32 1e-05, %v1777_v5 }
 0xaa7   :  { %2435 = vrsqrt.f32 %v1779_v14  ;;  %vm1787_vm7 = vweird.f32 %v1779_v14 }
 0xaad   :  { %v2436_v19 = vpop.eup %2435  ;;  %v1776_v31 = vpop.xlane.xlu2 %1775 }
 0xaae   :  { %v1782_v8 = vmul.f32 %v2436_v19, %v1779_v14  ;;  %v1778_v33 = vmul.f32 %v1776_v31, %v3267_v53  ;;  %vm1788_vm9 = vweird.f32 %v2436_v19 }
 0xaaf   :  { %vm1789_vm8 = vmor %vm1787_vm7, %vm1788_vm9 }
 0xab0   :  { %v1783_v34 = vmul.f32 %v2436_v19, %v1782_v8  ;;  %v1780_v58 = vadd.f32 1e-05, %v1778_v33 }
 0xab2   :  { %v1784_v35 = vmul.f32 0.5, %v1783_v34  ;;  %2437 = vrsqrt.f32 %v1780_v58  ;;  %vm1797_vm4 = vweird.f32 %v1780_v58 }
 0xab4   :  { %v1785_v22 = vsub.f32 1.5, %v1784_v35 }
 0xab6   :  { %v1786_v37 = vmul.f32 %v2436_v19, %v1785_v22 }
 0xab8   :  { %v2438_v15 = vpop.eup %2437  ;;  %v1790_v38 = vsel %vm1789_vm8, %v2436_v19, %v1786_v37 }
 0xab9   :  { %v1801_v48 = vmul.f32 %v1790_v38, %v3528_v55  ;;  %v1792_v54 = vmul.f32 %v2438_v15, %v1780_v58  ;;  %vm1798_vm11 = vweird.f32 %v2438_v15 }
 0xaba   :  { %vm1799_vm5 = vmor %vm1797_vm4, %vm1798_vm11 }
 0xabb   :  { %v1806_v59 = vmul.f32 %v2353_v23, %v1801_v48  ;;  %v1793_v30 = vmul.f32 %v2438_v15, %v1792_v54 }
 0xabd   :  { %v1811_v62 = vadd.f32 %v2354_v39, %v1806_v59  ;;  %v1794_v3 = vmul.f32 0.5, %v1793_v30 }
 0xabf   :  { %v1795_v17 = vsub.f32 1.5, %v1794_v3  ;;  %v1815_v42 = vadd.f32 %v1813_v40, %v1811_v62 }
 0xac1   :  { %v1796_v36 = vmul.f32 %v2438_v15, %v1795_v17  ;;  %v3549_v43 = vmax.f32 %v1815_v42, 0.0 }
 0xac3   :  { %v1800_v13 = vsel %vm1799_vm5, %v2438_v15, %v1796_v36  ;;  %2278 = vmatmul.msk.f32.vlgmr.msra.gmra.mxu0 %vm1039_vm12, %v3549_v43  ;;  %2280 = vmatmul.msk.f32.vlgmr.msra.gmra.mxu1 %vm1039_vm12, %v3549_v43 }
 0xac4   :  { %v1802_v47 = vmul.f32 %v1800_v13, %v3534_v45  ;;  %2282 = vmatmul.msk.f32.vlgmr.msra.gmra.mxu2 %vm1039_vm12, %v3549_v43  ;;  %2284 = vmatmul.msk.f32.vlgmr.msra.gmra.mxu3 %vm1039_vm12, %v3549_v43 }
 0xac6   :  { %v1807_v41 = vmul.f32 %v2353_v23, %v1802_v47 }
 0xac8   :  { %v1812_v49 = vadd.f32 %v2354_v39, %v1807_v41 }
 0xaca   :  { %v1816_v46 = vadd.f32 %v1814_v51, %v1812_v49 }
 0xacc   :  { %v3561_v50 = vmax.f32 %v1816_v46, 0.0 }
 0xace   :  { %2279 = vmatmul.msk.f32.gmra.mxu0 %vm1039_vm12, %v3561_v50  ;;  %2281 = vmatmul.msk.f32.gmra.mxu1 %vm1039_vm12, %v3561_v50 }
 0xacf   :  { %2283 = vmatmul.msk.f32.gmra.mxu2 %vm1039_vm12, %v3561_v50  ;;  %2285 = vmatmul.msk.f32.gmra.mxu3 %vm1039_vm12, %v3561_v50 }
 0xb40   :  { %v1873_v55 = vpop.f32.mrf.mxu1  ;;  %v1846_v44 = vpop.f32.mrf.mxu0 }
 0xb47   :  { %v1900_v60 = vpop.f32.mrf.mxu2  ;;  %v1927_v40 = vpop.f32.mrf.mxu3 }
 0xb4b   :  { %v1876_v61 = vpop.f32.mrf.mxu1  ;;  %v1849_v0 = vpop.f32.mrf.mxu0 }
 0xb4c   :  { %2286 = vmatpush.xpose.msk.msrb.mxu0 %vm1039_vm12, %v1876_v61 }
 0xb50   :  { %2287 = vmatpush.xpose.msk.msrb.mxu0 %vm1039_vm12, %v1873_v55 }
 0xb52   :  { %v1903_v63 = vpop.f32.mrf.mxu2  ;;  %v1930_v47 = vpop.f32.mrf.mxu3 }
 0xb53   :  { %2042 = vmatpush.msrb.mxu1 %v1903_v63  ;;  %2288 = vmatmul.msk.f32.vlgmr.msrb.gmra.mxu0 %vm1039_vm12, %v1846_v44 }
 0xb55   :  { %2043 = vmatpush.msrb.mxu1 %v1900_v60 }
 0xb5b   :  { %2289 = vmatmul.msk.f32.gmra.mxu0 %vm1039_vm12, %v1849_v0 }
 0xbd0   :  { %v1962_v45 = vpop.f32.mrf.mxu0 }
 0xbd1   :  { %v1963_v2 = vadd.f32 %v1962_v45, %v3100_v11 }
 0xbd3   :  { %v1968_v57 = vsel %vm528_vm10, %v1963_v2, -inf }
 0xbd4   :  { %1969 = vmax.xlane.f32.xlu0 %v1968_v57 }
 0xbd8   :  { %v1965_v4 = vpop.f32.mrf.mxu0 }
 0xbd9   :  { %v1966_v5 = vadd.f32 %v1965_v4, %v3110_v21  ;;  %v2120_v4 = vld [vmem:[#allocation23 + $0x18] sm:$0xff] }
 0xbda   :  { %2143 = vmatpush.msrb.mxu2 %v2120_v4 }
 0xbdb   :  { %v1971_v24 = vsel %vm528_vm10, %v1966_v5, -inf }
 0xbdc   :  { %1972 = vmax.xlane.f32.xlu1 %v1971_v24 }
 0xc47   :  { %v1970_v9 = vpop.xlane.xlu0 %1969 }
 0xc48   :  { %v1974_v12 = vsub.f32 %v1963_v2, %v1970_v9 }
 0xc4a   :  { %v1976_v14 = vmul.f32 1.442695, %v1974_v12  ;;  %v2118_v12 = vld [vmem:[#allocation23 + $0x8] sm:$0xff] }
 0xc4c   :  { %2439 = vpow2.f32 %v1976_v14 }
 0xc4f   :  { %v1973_v16 = vpop.xlane.xlu1 %1972 }
 0xc50   :  { %v1975_v18 = vsub.f32 %v1966_v5, %v1973_v16  ;;  %v2119_v5 = vld [vmem:[#allocation23 + $0x10] sm:$0xff]  ;;  %v2117_v16 = vld [vmem:[#allocation23] sm:$0xff] }
 0xc51   :  { %2144 = vmatpush.msrb.mxu2 %v2119_v5 }
 0xc52   :  { %v2440_v20 = vpop.eup %2439  ;;  %v1978_v10 = vmul.f32 1.442695, %v1975_v18  ;;  %v2159_v18 = vld [vmem:[%s3655_s24 + $0x18] sm:$0xff] }
 0xc53   :  { %v1980_v25 = vmul.f32 %v3373_v27, %v2440_v20  ;;  %2145 = vmatpush.msrb.mxu2 %v2118_v12  ;;  %2182 = vmatpush.msrb.mxu3 %v2159_v18 }
 0xc54   :  { %2441 = vpow2.f32 %v1978_v10 }
 0xc55   :  { %v1982_v11 = vsel %vm528_vm10, %v1980_v25, 0.0  ;;  %2146 = vmatpush.msrb.mxu2 %v2117_v16 }
 0xc56   :  { %1983 = vadd.xlane.f32.xlu2 %v1982_v11 }
 0xc5a   :  { %v2442_v26 = vpop.eup %2441 }
 0xc5b   :  { %v1981_v21 = vmul.f32 %v3380_v56, %v2442_v26 }
 0xc5d   :  { %v1985_v52 = vsel %vm528_vm10, %v1981_v21, 0.0 }
 0xc5e   :  { %1986 = vadd.xlane.f32.xlu0 %v1985_v52 }
 0xcc9   :  { %v1984_v28 = vpop.xlane.xlu2 %1983 }
 0xcca   :  { %vm1988_vm6 = vcmp.gt.f32.partialorder %v1984_v28, 0.0 }
 0xccb   :  { %v1990_v6 = vsel %vm1988_vm6, %v1984_v28, 1.0 }
 0xccc   :  { %2443 = vrcp.f32 %v1990_v6  ;;  %v2003_v19 = vand.u32 2147483648, %v1990_v6  ;;  %v2001_v8 = vand.u32 2147483647, %v1990_v6  ;;  %vm1997_vm15 = vweird.f32 %v1990_v6 }
 0xcce   :  { %v2004_v34 = vor.u32 1.1754944e-38, %v2003_v19  ;;  %vm2002_vm1 = vcmp.eq.f32.partialorder %v2001_v8, 8.507059e+37 }
 0xcd1   :  { %v1987_v32 = vpop.xlane.xlu0 %1986 }
 0xcd2   :  { %v2444_v7 = vpop.eup %2443  ;;  %vm1989_vm13 = vcmp.gt.f32.partialorder %v1987_v32, 0.0 }
 0xcd3   :  { %v1993_v29 = vmul.f32 %v2444_v7, %v1990_v6  ;;  %v1991_v1 = vsel %vm1989_vm13, %v1987_v32, 1.0  ;;  %vm1998_vm14 = vweird.f32 %v2444_v7  ;;  %vm2193_vm13 = vcmask 15360  }
 0xcd4   :  { %2445 = vrcp.f32 %v1991_v1  ;;  %vm1999_vm0 = vmor %vm1997_vm15, %vm1998_vm14  ;;  %v2018_v15 = vand.u32 2147483648, %v1991_v1  ;;  %v2016_v39 = vand.u32 2147483647, %v1991_v1  ;;  %vm2012_vm3 = vweird.f32 %v1991_v1 }
 0xcd5   :  { %v1994_v27 = vsub.f32 1.0, %v1993_v29  ;;  %v2355_v29 = vld [vmem:[%s3651_s20] ss:$0 sm:$0xff] }
 0xcd6   :  { %v2019_v54 = vor.u32 1.1754944e-38, %v2018_v15  ;;  %vm2017_vm7 = vcmp.eq.f32.partialorder %v2016_v39, 8.507059e+37 }
 0xcd7   :  { %v1995_v31 = vmul.f32 %v2444_v7, %v1994_v27 }
 0xcd9   :  { %v1996_v33 = vadd.f32 %v2444_v7, %v1995_v31 }
 0xcda   :  { %v2446_v56 = vpop.eup %2445 }
 0xcdb   :  { %v2000_v58 = vsel %vm1999_vm0, %v2444_v7, %v1996_v33  ;;  %v2008_v35 = vmul.f32 %v2446_v56, %v1991_v1  ;;  %vm2013_vm2 = vweird.f32 %v2446_v56 }
 0xcdc   :  { %v2005_v22 = vsel %vm2002_vm1, %v2004_v34, %v2000_v58  ;;  %vm2014_vm9 = vmor %vm2012_vm3, %vm2013_vm2  ;;  %v2113_v34 = vmul.f32 0.1, %v3549_v43  ;;  %v2157_v43 = vld [vmem:[%s3655_s24 + $0x8] sm:$0xff] }
 0xcdd   :  { %v2006_v37 = vmul.f32 %v2005_v22, %v1980_v25  ;;  %v2009_v23 = vsub.f32 1.0, %v2008_v35 }
 0xcdf   :  { %v2010_v38 = vmul.f32 %v2446_v56, %v2009_v23  ;;  %2290 = vmatmul.msk.f32.vlgmr.msrb.gmra.mxu1 %vm528_vm10, %v2006_v37 }
 0xce1   :  { %v2011_v48 = vadd.f32 %v2446_v56, %v2010_v38  ;;  %v2114_v38 = vmul.f32 0.1, %v3561_v50  ;;  %v2357_v50 = vld [vmem:[%s3654_s23] ss:$0 sm:$0xff]  ;;  %s3685_s23 = sld [smem:[#allocation44_spill]] }
 0xce3   :  { %v2015_v59 = vsel %vm2014_vm9, %v2446_v56, %v2011_v48  ;;  %v2158_v48 = vld [vmem:[%s3655_s24 + $0x10] sm:$0xff] }
 0xce4   :  { %v2020_v30 = vsel %vm2017_vm7, %v2019_v54, %v2015_v59  ;;  %2183 = vmatpush.msrb.mxu3 %v2158_v48  ;;  %v2156_v54 = vld [vmem:[%s3655_s24] sm:$0xff] }
 0xce5   :  { %v2021_v62 = vmul.f32 %v2020_v30, %v1981_v21 }
 0xce6   :  { %2184 = vmatpush.msrb.mxu3 %v2157_v43 }
 0xce7   :  { %2291 = vmatmul.msk.f32.gmra.mxu1 %vm528_vm10, %v2021_v62 }
 0xce8   :  { %2185 = vmatpush.msrb.mxu3 %v2156_v54 }
 0xd5c   :  { %v2045_v3 = vpop.f32.mrf.mxu1 }
 0xd5d   :  { %2051 = vst.msk [vmem:[#allocation2] sm:$0xff] %vm1039_vm12, %v2045_v3 }
 0xd64   :  { %v2048_v17 = vpop.f32.mrf.mxu1  ;;  %v2053_v42 = vld [vmem:[#allocation2] sm:$0xff] }
 0xd65   :  { %2052 = vst.msk [vmem:[#allocation2 + $0x8] sm:$0xff] %vm1039_vm12, %v2048_v17  ;;  %v2055_v36 = vadd.f32 %v2053_v42, %v1927_v40  ;;  %v2358_v42 = vld [vmem:[%s3656_s25] ss:$0 sm:$0xff] }
 0xd67   :  { %v2059_v13 = vsel %vm1039_vm12, %v2055_v36, 0.0 }
 0xd68   :  { %2060 = vadd.xlane.f32.xlu1 %v2059_v13 }
 0xd6c   :  { %v2054_v41 = vld [vmem:[#allocation2 + $0x8] sm:$0xff] }
 0xd6d   :  { %v2056_v49 = vadd.f32 %v2054_v41, %v1930_v47 }
 0xd6f   :  { %v2062_v51 = vsel %vm1039_vm12, %v2056_v49, 0.0 }
 0xd70   :  { %2063 = vadd.xlane.f32.xlu2 %v2062_v51 }
 0xddb   :  { %v2061_v46 = vpop.xlane.xlu1 %2060 }
 0xddc   :  { %v2065_v55 = vmul.f32 %v2061_v46, %v3267_v53 }
 0xdde   :  { %v2067_v60 = vsub.f32 %v2055_v36, %v2065_v55 }
 0xde0   :  { %v2069_v61 = vmul.f32 %v2067_v60, %v2067_v60 }
 0xde2   :  { %v2071_v44 = vsel %vm1039_vm12, %v2069_v61, 0.0 }
 0xde3   :  { %2072 = vadd.xlane.f32.xlu0 %v2071_v44  ;;  %v2064_v63 = vpop.xlane.xlu2 %2063 }
 0xde4   :  { %v2066_v0 = vmul.f32 %v2064_v63, %v3267_v53 }
 0xde6   :  { %v2068_v45 = vsub.f32 %v2056_v49, %v2066_v0 }
 0xde8   :  { %v2070_v2 = vmul.f32 %v2068_v45, %v2068_v45 }
 0xdea   :  { %v2074_v57 = vsel %vm1039_vm12, %v2070_v2, 0.0 }
 0xdeb   :  { %2075 = vadd.xlane.f32.xlu1 %v2074_v57 }
 0xe56   :  { %v2073_v24 = vpop.xlane.xlu0 %2072 }
 0xe57   :  { %v2077_v9 = vmul.f32 %v2073_v24, %v3267_v53 }
 0xe59   :  { %v2079_v14 = vadd.f32 1e-05, %v2077_v9 }
 0xe5b   :  { %2447 = vrsqrt.f32 %v2079_v14  ;;  %vm2087_vm8 = vweird.f32 %v2079_v14 }
 0xe5e   :  { %v2076_v20 = vpop.xlane.xlu1 %2075 }
 0xe5f   :  { %v2078_v10 = vmul.f32 %v2076_v20, %v3267_v53  ;;  %v2356_v53 = vld [vmem:[%s3652_s21] ss:$0 sm:$0xff] }
 0xe61   :  { %v2448_v25 = vpop.eup %2447  ;;  %v2080_v11 = vadd.f32 1e-05, %v2078_v10 }
 0xe62   :  { %v2082_v26 = vmul.f32 %v2448_v25, %v2079_v14  ;;  %vm2088_vm10 = vweird.f32 %v2448_v25 }
 0xe63   :  { %2449 = vrsqrt.f32 %v2080_v11  ;;  %vm2089_vm11 = vmor %vm2087_vm8, %vm2088_vm10  ;;  %vm2097_vm5 = vweird.f32 %v2080_v11 }
 0xe64   :  { %v2083_v21 = vmul.f32 %v2448_v25, %v2082_v26 }
 0xe66   :  { %v2084_v52 = vmul.f32 0.5, %v2083_v21 }
 0xe68   :  { %v2085_v28 = vsub.f32 1.5, %v2084_v52 }
 0xe69   :  { %v2450_v6 = vpop.eup %2449 }
 0xe6a   :  { %v2086_v32 = vmul.f32 %v2448_v25, %v2085_v28  ;;  %v2092_v7 = vmul.f32 %v2450_v6, %v2080_v11  ;;  %vm2098_vm4 = vweird.f32 %v2450_v6 }
 0xe6b   :  { %vm2099_vm6 = vmor %vm2097_vm5, %vm2098_vm4 }
 0xe6c   :  { %v2090_v1 = vsel %vm2089_vm11, %v2448_v25, %v2086_v32  ;;  %v2093_v27 = vmul.f32 %v2450_v6, %v2092_v7 }
 0xe6d   :  { %v2101_v19 = vmul.f32 %v2090_v1, %v2067_v60 }
 0xe6e   :  { %v2094_v31 = vmul.f32 0.5, %v2093_v27 }
 0xe6f   :  { %v2106_v8 = vmul.f32 %v2355_v29, %v2101_v19 }
 0xe70   :  { %v2095_v33 = vsub.f32 1.5, %v2094_v31 }
 0xe71   :  { %v2111_v56 = vadd.f32 %v2356_v53, %v2106_v8 }
 0xe72   :  { %v2096_v58 = vmul.f32 %v2450_v6, %v2095_v33 }
 0xe73   :  { %v2115_v35 = vadd.f32 %v2113_v34, %v2111_v56 }
 0xe74   :  { %v2100_v22 = vsel %vm2099_vm6, %v2450_v6, %v2096_v58 }
 0xe75   :  { %v2102_v37 = vmul.f32 %v2100_v22, %v2068_v45  ;;  %2292 = vmatmul.msk.f32.vlgmr.msrb.gmra.mxu2 %vm1039_vm12, %v2115_v35 }
 0xe77   :  { %v2107_v23 = vmul.f32 %v2355_v29, %v2102_v37 }
 0xe79   :  { %v2112_v15 = vadd.f32 %v2356_v53, %v2107_v23 }
 0xe7b   :  { %v2116_v39 = vadd.f32 %v2114_v38, %v2112_v15 }
 0xe7d   :  { %2293 = vmatmul.msk.f32.gmra.mxu2 %vm1039_vm12, %v2116_v39 }
 0xef8   :  { %v2148_v59 = vpop.f32.mrf.mxu2 }
 0xef9   :  { %v2149_v30 = vadd.f32 %v2357_v50, %v2148_v59 }
 0xefb   :  { %v2154_v62 = vmax.f32 %v2149_v30, 0.0 }
 0xefd   :  { %2294 = vmatmul.msk.f32.vlgmr.msrb.gmra.mxu3 %vm1039_vm12, %v2154_v62 }
 0xf00   :  { %v2151_v3 = vpop.f32.mrf.mxu2 }
 0xf01   :  { %v2152_v40 = vadd.f32 %v2357_v50, %v2151_v3 }
 0xf03   :  { %v2155_v17 = vmax.f32 %v2152_v40, 0.0 }
 0xf05   :  { %2295 = vmatmul.msk.f32.gmra.mxu3 %vm1039_vm12, %v2155_v17 }
 0xf80   :  { %v2187_v36 = vpop.f32.mrf.mxu3 }
 0xf81   :  { %v2188_v13 = vadd.f32 %v2358_v42, %v2187_v36 }
 0xf83   :  { %2194 = vst.msk [vmem:[%s3685_s23] sm:$0xff] %vm2193_vm13, %v2188_v13 }
 0xf88   :  { %v2190_v47 = vpop.f32.mrf.mxu3 }
 0xf89   :  { %v2191_v41 = vadd.f32 %v2358_v42, %v2190_v47 }
 0xf8b   :  { %2195 = vst.msk [vmem:[%s3685_s23 + $0x8] sm:$0xff] %vm2193_vm13, %v2191_v41 }
 0xf8c   :  { %2200 = vsyncpa [#allocation4], 1 }
 0xf8d   :  { %2201 = vsyncpa [#allocation6], 1 }
 0xf8e   :  { %2202 = vsyncpa [#allocation9], 1 }
 0xf8f   :  { %2203 = vsyncpa [#allocation12], 1 }
 0xf90   :  { %2204 = vsyncpa [#allocation15], 1 }
 0xf91   :  { %2205 = vsyncpa [#allocation18], 1 }
 0xf92   :  { %2206 = vsyncpa [#allocation21], 1 }
 0xf93   :  { %2207 = vsyncpa [#allocation24], 1 }

</bundles_post_ra>
